<compile_context>
chip_gen: v7x
topology: tpu7x:2x2x1
jax: 0.10.0
libtpu: 0.0.40
codegen_flags: <defaults>
</compile_context>

<pallas_src>
import functools

import jax
import jax.numpy as jnp
from jax.experimental import pallas as pl
from jax.experimental.pallas import tpu as pltpu

_EPS = 1e-5  # PyTorch BatchNorm1d default


# ---------------------------------------------------------------------------
# In-kernel helpers
# ---------------------------------------------------------------------------
def _conv3_stacked(x2d, w_ref, bias_ref, seq_len, c_out):
    """Conv1d(kernel=3, stride=1, padding=1) as ONE tap-stacked MXU matmul.

    x2d:      (R, Ci) bf16 activations, R = tile_m * T, rows ordered (m, t).
    w_ref:    Ref (Ci, 3*Co) bf16; taps stacked on the output axis:
              w_stacked[ci, tap*Co + co] = w_torch[co, ci, tap].
    bias_ref: Ref (1, Co) f32.
    Returns (R, Co) f32 (pre-ReLU).

    Matmul-then-shift: instead of building two shifted copies of the wide input
    (2 full-tensor VMEM copies per conv) we matmul the un-shifted input once and
    rotate the narrow per-tap outputs along T on the XLU; the cyclic wrap rows
    (which would mix neighbouring snippets) are masked back to the conv's zero
    padding with an iota mask.
    """
    r = x2d.shape[0]
    z = jnp.dot(x2d, w_ref[...], preferred_element_type=jnp.float32)  # (R, 3*Co)
    z_prev = z[:, :c_out]              # tap applied to x[t-1]
    z_mid = z[:, c_out:2 * c_out]      # tap applied to x[t]
    z_next = z[:, 2 * c_out:]          # tap applied to x[t+1]

    t_idx = jax.lax.broadcasted_iota(jnp.int32, (r, 1), 0) % seq_len
    y = z_mid + bias_ref[...]
    # y[t] += z_prev[t-1]  (excluded at t==0: zero padding)
    y = y + jnp.where(t_idx == 0, 0.0, pltpu.roll(z_prev, shift=1, axis=0))
    # y[t] += z_next[t+1]  (excluded at t==T-1: zero padding); shift=r-1 == -1 cyclic
    y = y + jnp.where(t_idx == seq_len - 1, 0.0,
                      pltpu.roll(z_next, shift=r - 1, axis=0))
    return y


def _stage1_kernel(x_ref, s1_ref, t1_ref, w1_ref, b1_ref,
                   h1_ref, sum_ref, ssq_ref):
    """BN1 (pre-folded) -> Conv1d(C -> C/4, k=3, p=1) -> ReLU, + BN2 partial stats."""
    tm, seq_len, c_in = x_ref.shape
    c4 = h1_ref.shape[-1]
    x = x_ref[...]                                             # (tm, T, C) f32
    xn = x * s1_ref[...][None] + t1_ref[...][None]             # BN1 as one FMA
    xb = xn.astype(jnp.bfloat16).reshape(tm * seq_len, c_in)   # bf16 MXU operand
    y = _conv3_stacked(xb, w1_ref, b1_ref, seq_len, c4)
    h1 = jnp.maximum(y, 0.0)                                   # (tm*T, C4) f32
    h1_ref[...] = h1.reshape(tm, seq_len, c4)
    # Per-tile partial statistics for BN2 (saves a full HBM re-read of h1 later).
    sum_ref[...] = jnp.sum(h1, axis=0, keepdims=True)[None]          # (1, 1, C4)
    ssq_ref[...] = jnp.sum(h1 * h1, axis=0, keepdims=True)[None]     # (1, 1, C4)


def _stage2_kernel(h1_ref, s2_ref, t2_ref, w2_ref, b2_ref, lw_ref, lb_ref,
                   score_ref):
    """BN2 -> Conv1d(C/4 -> C/16, k=3, p=1) -> ReLU -> Linear(C/16, 1) -> sigmoid."""
    tm, seq_len, c4 = h1_ref.shape
    c16 = b2_ref.shape[-1]
    h1 = h1_ref[...]                                           # (tm, T, C4) f32
    h1n = h1 * s2_ref[...][None] + t2_ref[...][None]           # BN2 as one FMA
    hb = h1n.astype(jnp.bfloat16).reshape(tm * seq_len, c4)
    y = _conv3_stacked(hb, w2_ref, b2_ref, seq_len, c16)
    h2 = jnp.maximum(y, 0.0).reshape(tm, seq_len, c16)
    # Linear(C/16 -> 1): far too narrow for the MXU -> VPU multiply + lane reduce.
    logits = jnp.sum(h2 * lw_ref[...][None], axis=-1) + lb_ref[...]
    score_ref[...] = jax.nn.sigmoid(logits)                    # (tm, T)


# ---------------------------------------------------------------------------
# Host wrapper
# ---------------------------------------------------------------------------
def _pick_tile_m(m, t, c, target_bytes=8 << 20):
    """Largest row tile that divides M, is a multiple of 8 (output-block layout
    constraint) and keeps the double-buffered f32 input tile ~<= target_bytes."""
    rows = max(8, target_bytes // (2 * 4 * t * c))
    if m <= rows:
        return m
    best = None
    for cand in range(8, int(min(rows, m)) + 1, 8):
        if m % cand == 0:
            best = cand
    return best if best is not None else m


def conv_baseline_forward(video, params, k=3, tile_m=None):
    """Forward of `conv_baseline_model` (use_mst=False) via two Pallas kernels.

    BatchNorm layers use training-mode batch statistics (module default)."""
    B, N, T, C = video.shape
    M = B * N
    C4, C16 = C // 4, C // 16
    x = video.reshape(M, T, C).astype(jnp.float32)

    if tile_m is None:
        tile_m = _pick_tile_m(M, T, C)
    assert M % tile_m == 0 and (tile_m == M or tile_m % 8 == 0), (M, tile_m)
    grid_m = M // tile_m

    # ---- BN1 batch statistics: tiny XLA reduction, hoisted so the Pallas grid
    #      is embarrassingly parallel over M (enables pipelining + megacore). ----
    mu1 = jnp.mean(x, axis=(0, 1))
    var1 = jnp.mean(jnp.square(x - mu1), axis=(0, 1))
    scale1 = (params["bn1_w"] * jax.lax.rsqrt(var1 + _EPS)).reshape(1, C)
    shift1 = params["bn1_b"].reshape(1, C) - mu1.reshape(1, C) * scale1

    # Conv weights: torch (Co, Ci, K) -> tap-stacked (Ci, 3*Co) bf16 MXU operands:
    #   w_stacked[ci, tap*Co + co] = w_torch[co, ci, tap]
    w1s = jnp.transpose(params["conv1_w"], (1, 2, 0)).reshape(C, 3 * C4)
    w1s = w1s.astype(jnp.bfloat16)
    w2s = jnp.transpose(params["conv2_w"], (1, 2, 0)).reshape(C4, 3 * C16)
    w2s = w2s.astype(jnp.bfloat16)
    b1 = params["conv1_b"].reshape(1, C4).astype(jnp.float32)
    b2 = params["conv2_b"].reshape(1, C16).astype(jnp.float32)
    lw = params["lin_w"].reshape(1, C16).astype(jnp.float32)
    lb = params["lin_b"].reshape(1, 1).astype(jnp.float32)

    cparams = pltpu.CompilerParams(
        dimension_semantics=("parallel",),     # shard M tiles across TensorCores
        vmem_limit_bytes=32 * 1024 * 1024,     # bump v5e's 16 MiB scoped default
    )

    # -------- Stage 1: BN1 + conv1 + ReLU   (M, T, C) -> (M, T, C/4) ----------
    h1, psum, pssq = pl.pallas_call(
        _stage1_kernel,
        grid=(grid_m,),
        in_specs=[
            pl.BlockSpec((tile_m, T, C), lambda i: (i, 0, 0)),
            pl.BlockSpec((1, C), lambda i: (0, 0)),
            pl.BlockSpec((1, C), lambda i: (0, 0)),
            pl.BlockSpec((C, 3 * C4), lambda i: (0, 0)),
            pl.BlockSpec((1, C4), lambda i: (0, 0)),
        ],
        out_specs=[
            pl.BlockSpec((tile_m, T, C4), lambda i: (i, 0, 0)),
            pl.BlockSpec((1, 1, C4), lambda i: (i, 0, 0)),
            pl.BlockSpec((1, 1, C4), lambda i: (i, 0, 0)),
        ],
        out_shape=[
            jax.ShapeDtypeStruct((M, T, C4), jnp.float32),
            jax.ShapeDtypeStruct((grid_m, 1, C4), jnp.float32),
            jax.ShapeDtypeStruct((grid_m, 1, C4), jnp.float32),
        ],
        compiler_params=cparams,
        cost_estimate=pl.CostEstimate(
            flops=2 * M * T * C * 3 * C4 + 8 * M * T * C4 + 6 * M * T * C,
            transcendentals=0,
            bytes_accessed=4 * M * T * (C + C4) + 2 * C * 3 * C4),
    )(x, scale1, shift1, w1s, b1)

    # ---- BN2 batch statistics from the per-tile partials (no extra h1 read). ----
    cnt = float(M * T)
    mu2 = jnp.sum(psum[:, 0, :], axis=0) / cnt                  # (C4,)
    ex2 = jnp.sum(pssq[:, 0, :], axis=0) / cnt
    var2 = jnp.maximum(ex2 - mu2 * mu2, 0.0)
    scale2 = (params["bn2_w"] * jax.lax.rsqrt(var2 + _EPS)).reshape(1, C4)
    shift2 = params["bn2_b"].reshape(1, C4) - mu2.reshape(1, C4) * scale2

    # -------- Stage 2: BN2 + conv2 + ReLU + Linear + sigmoid -> (M, T) --------
    score = pl.pallas_call(
        _stage2_kernel,
        grid=(grid_m,),
        in_specs=[
            pl.BlockSpec((tile_m, T, C4), lambda i: (i, 0, 0)),
            pl.BlockSpec((1, C4), lambda i: (0, 0)),
            pl.BlockSpec((1, C4), lambda i: (0, 0)),
            pl.BlockSpec((C4, 3 * C16), lambda i: (0, 0)),
            pl.BlockSpec((1, C16), lambda i: (0, 0)),
            pl.BlockSpec((1, C16), lambda i: (0, 0)),
            pl.BlockSpec((1, 1), lambda i: (0, 0)),
        ],
        out_specs=pl.BlockSpec((tile_m, T), lambda i: (i, 0)),
        out_shape=jax.ShapeDtypeStruct((M, T), jnp.float32),
        compiler_params=cparams,
        cost_estimate=pl.CostEstimate(
            flops=2 * M * T * C4 * 3 * C16 + 8 * M * T * C16,
            transcendentals=M * T,
            bytes_accessed=4 * M * T * (C4 + 1) + 2 * C4 * 3 * C16),
    )(h1, scale2, shift2, w2s, b2, lw, lb)

    # ---- Final O(B*T) reductions in plain XLA: mean over N snippets, mean of
    #      the last k frames (reference's sort() output is unused there). ----
    snippet = jnp.mean(score.reshape(B, N, T), axis=1)          # (B, T)
    topk = jnp.mean(snippet[:, T - k:], axis=-1)                # (B,)
    return {"snippet_score": snippet, "topk_score": topk}


# ---------------------------------------------------------------------------
# Parameter init (PyTorch-like: uniform(+-1/sqrt(fan_in)); BN: weight=1, bias=0)
# ---------------------------------------------------------------------------
def init_params(key, dim):
    C4, C16 = dim // 4, dim // 16
    ks = jax.random.split(key, 4)

    def conv_init(kk, co, ci, ksz):
        bound = 1.0 / (ci * ksz) ** 0.5
        kw, kb = jax.random.split(kk)
        w = jax.random.uniform(kw, (co, ci, ksz), jnp.float32, -bound, bound)
        b = jax.random.uniform(kb, (co,), jnp.float32, -bound, bound)
        return w, b

    conv1_w, conv1_b = conv_init(ks[0], C4, dim, 3)
    conv2_w, conv2_b = conv_init(ks[1], C16, C4, 3)
    lbound = 1.0 / (C16 ** 0.5)
    lin_w = jax.random.uniform(ks[2], (1, C16), jnp.float32, -lbound, lbound)
    lin_b = jax.random.uniform(ks[3], (1,), jnp.float32, -lbound, lbound)
    return dict(
        bn1_w=jnp.ones((dim,), jnp.float32), bn1_b=jnp.zeros((dim,), jnp.float32),
        conv1_w=conv1_w, conv1_b=conv1_b,
        bn2_w=jnp.ones((C4,), jnp.float32), bn2_b=jnp.zeros((C4,), jnp.float32),
        conv2_w=conv2_w, conv2_b=conv2_b,
        lin_w=lin_w, lin_b=lin_b,
    )


if __name__ == "__main__":
    B, N, T, dim, k = 2, 8, 16, 64, 3            # M = B*N = 16 rows, tile_m = 8 -> grid of 2
    key = jax.random.PRNGKey(0)
    kv, kp = jax.random.split(key)
    video = jax.random.normal(kv, (B, N, T, dim), jnp.float32)
    params = init_params(kp, dim)

    fwd = jax.jit(functools.partial(conv_baseline_forward, k=k, tile_m=8))
    out = fwd(video, params)
    jax.block_until_ready(out)
    assert out["snippet_score"].shape == (B, T)
    assert out["topk_score"].shape == (B,)
    assert bool(jnp.all(jnp.isfinite(out["snippet_score"])))
    assert bool(jnp.all((out["snippet_score"] >= 0) & (out["snippet_score"] <= 1)))
    print("KERNEL_OK")
</pallas_src>

<mosaic_0001>
module attributes {stable_mosaic.version = 11 : i64} {
  func.func @_stage2_kernel(%arg0: i32, %arg1: memref<8x16x16xf32, #tpu.memory_space<vmem>>, %arg2: memref<1x16xf32, #tpu.memory_space<vmem>>, %arg3: memref<1x16xf32, #tpu.memory_space<vmem>>, %arg4: memref<16x12xbf16, #tpu.memory_space<vmem>>, %arg5: memref<1x4xf32, #tpu.memory_space<vmem>>, %arg6: memref<1x4xf32, #tpu.memory_space<vmem>>, %arg7: memref<1x1xf32, #tpu.memory_space<vmem>>, %arg8: memref<8x16xf32, #tpu.memory_space<vmem>>) attributes {dimension_semantics = [#tpu.dimension_semantics<parallel>], iteration_bounds = array<i64: 2>, scalar_prefetch = 0 : i64, scratch_operands = 0 : i64, tpu.core_type = #tpu.core_type<tc>, window_params = [{transform_indices = @transform_0, window_bounds = array<i64: 8, 16, 16>}, {pipeline_mode = #tpu.pipeline_mode<synchronous>, transform_indices = @transform_1, window_bounds = array<i64: 1, 16>}, {pipeline_mode = #tpu.pipeline_mode<synchronous>, transform_indices = @transform_2, window_bounds = array<i64: 1, 16>}, {pipeline_mode = #tpu.pipeline_mode<synchronous>, transform_indices = @transform_3, window_bounds = array<i64: 16, 12>}, {pipeline_mode = #tpu.pipeline_mode<synchronous>, transform_indices = @transform_4, window_bounds = array<i64: 1, 4>}, {pipeline_mode = #tpu.pipeline_mode<synchronous>, transform_indices = @transform_5, window_bounds = array<i64: 1, 4>}, {pipeline_mode = #tpu.pipeline_mode<synchronous>, transform_indices = @transform_6, window_bounds = array<i64: 1, 1>}, {transform_indices = @transform_7, window_bounds = array<i64: 8, 16>}]} {
    %c0 = arith.constant 0 : index
    %c0_0 = arith.constant 0 : index
    %c0_1 = arith.constant 0 : index
    %0 = vector.load %arg1[%c0, %c0_0, %c0_1] : memref<8x16x16xf32, #tpu.memory_space<vmem>>, vector<8x16x16xf32>
    %c0_2 = arith.constant 0 : index
    %c0_3 = arith.constant 0 : index
    %1 = vector.load %arg2[%c0_2, %c0_3] : memref<1x16xf32, #tpu.memory_space<vmem>>, vector<1x16xf32>
    %2 = vector.shape_cast %1 : vector<1x16xf32> to vector<1x1x16xf32>
    %3 = vector.broadcast %2 : vector<1x1x16xf32> to vector<8x16x16xf32>
    %4 = arith.mulf %0, %3 : vector<8x16x16xf32>
    %c0_4 = arith.constant 0 : index
    %c0_5 = arith.constant 0 : index
    %5 = vector.load %arg3[%c0_4, %c0_5] : memref<1x16xf32, #tpu.memory_space<vmem>>, vector<1x16xf32>
    %6 = vector.shape_cast %5 : vector<1x16xf32> to vector<1x1x16xf32>
    %7 = vector.broadcast %6 : vector<1x1x16xf32> to vector<8x16x16xf32>
    %8 = arith.addf %4, %7 : vector<8x16x16xf32>
    %9 = arith.truncf %8 : vector<8x16x16xf32> to vector<8x16x16xbf16>
    %10 = vector.shape_cast %9 : vector<8x16x16xbf16> to vector<128x16xbf16>
    %c0_6 = arith.constant 0 : index
    %c0_7 = arith.constant 0 : index
    %11 = vector.load %arg4[%c0_6, %c0_7] : memref<16x12xbf16, #tpu.memory_space<vmem>>, vector<16x12xbf16>
    %cst = arith.constant dense<0.000000e+00> : vector<128x12xf32>
    %12 = tpu.matmul %10, %11, %cst {dimension_numbers = #tpu.dot_dimension_numbers<[1], [0], [0], [1], [0, 0, 1, 1], [], []>} : vector<128x16xbf16>, vector<16x12xbf16>, vector<128x12xf32> -> vector<128x12xf32>
    %13 = vector.extract_strided_slice %12 {offsets = [0, 0], sizes = [128, 4], strides = [1, 1]} : vector<128x12xf32> to vector<128x4xf32>
    %14 = vector.extract_strided_slice %12 {offsets = [0, 4], sizes = [128, 4], strides = [1, 1]} : vector<128x12xf32> to vector<128x4xf32>
    %15 = vector.extract_strided_slice %12 {offsets = [0, 8], sizes = [128, 4], strides = [1, 1]} : vector<128x12xf32> to vector<128x4xf32>
    %16 = tpu.iota {dimensions = array<i32: 0>} : vector<128x1xi32>
    %c16_i32 = arith.constant 16 : i32
    %c0_i32 = arith.constant 0 : i32
    %17 = arith.cmpi eq, %c16_i32, %c0_i32 : i32
    %c1_i32 = arith.constant 1 : i32
    %18 = arith.select %17, %c1_i32, %c16_i32 : i32
    %19 = vector.broadcast %18 : i32 to vector<128x1xi32>
    %20 = arith.remsi %16, %19 : vector<128x1xi32>
    %c0_i32_8 = arith.constant 0 : i32
    %21 = vector.broadcast %c0_i32_8 : i32 to vector<128x1xi32>
    %22 = arith.cmpi ne, %20, %21 : vector<128x1xi32>
    %c0_i32_9 = arith.constant 0 : i32
    %23 = vector.broadcast %c0_i32_9 : i32 to vector<128x1xi32>
    %24 = arith.cmpi slt, %20, %23 : vector<128x1xi32>
    %c0_i32_10 = arith.constant 0 : i32
    %25 = arith.cmpi slt, %18, %c0_i32_10 : i32
    %26 = vector.broadcast %25 : i1 to vector<128x1xi1>
    %27 = vector.broadcast %26 : vector<128x1xi1> to vector<128x1xi1>
    %28 = arith.xori %24, %27 : vector<128x1xi1>
    %29 = arith.andi %28, %22 : vector<128x1xi1>
    %30 = vector.broadcast %18 : i32 to vector<128x1xi32>
    %31 = arith.addi %20, %30 : vector<128x1xi32>
    %32 = arith.select %29, %31, %20 : vector<128x1xi1>, vector<128x1xi32>
    %c0_11 = arith.constant 0 : index
    %c0_12 = arith.constant 0 : index
    %33 = vector.load %arg5[%c0_11, %c0_12] : memref<1x4xf32, #tpu.memory_space<vmem>>, vector<1x4xf32>
    %34 = vector.broadcast %33 : vector<1x4xf32> to vector<128x4xf32>
    %35 = arith.addf %14, %34 : vector<128x4xf32>
    %c0_i32_13 = arith.constant 0 : i32
    %36 = vector.broadcast %c0_i32_13 : i32 to vector<128x1xi32>
    %37 = arith.cmpi eq, %32, %36 : vector<128x1xi32>
    %c1_i32_14 = arith.constant 1 : i32
    %38 = tpu.dynamic_rotate %13 by %c1_i32_14 dim 0 : vector<128x4xf32>, i32 -> vector<128x4xf32>
    %cst_15 = arith.constant 0.000000e+00 : f32
    %39 = vector.shape_cast %37 : vector<128x1xi1> to vector<128x1xi1>
    %40 = vector.broadcast %39 : vector<128x1xi1> to vector<128x4xi1>
    %41 = vector.broadcast %cst_15 : f32 to vector<128x4xf32>
    %42 = arith.select %40, %41, %38 : vector<128x4xi1>, vector<128x4xf32>
    %43 = arith.addf %35, %42 : vector<128x4xf32>
    %c15_i32 = arith.constant 15 : i32
    %44 = vector.broadcast %c15_i32 : i32 to vector<128x1xi32>
    %45 = arith.cmpi eq, %32, %44 : vector<128x1xi32>
    %c127_i32 = arith.constant 127 : i32
    %46 = tpu.dynamic_rotate %15 by %c127_i32 dim 0 : vector<128x4xf32>, i32 -> vector<128x4xf32>
    %cst_16 = arith.constant 0.000000e+00 : f32
    %47 = vector.shape_cast %45 : vector<128x1xi1> to vector<128x1xi1>
    %48 = vector.broadcast %47 : vector<128x1xi1> to vector<128x4xi1>
    %49 = vector.broadcast %cst_16 : f32 to vector<128x4xf32>
    %50 = arith.select %48, %49, %46 : vector<128x4xi1>, vector<128x4xf32>
    %51 = arith.addf %43, %50 : vector<128x4xf32>
    %cst_17 = arith.constant 0.000000e+00 : f32
    %52 = vector.broadcast %cst_17 : f32 to vector<128x4xf32>
    %53 = arith.maximumf %51, %52 : vector<128x4xf32>
    %54 = vector.shape_cast %53 : vector<128x4xf32> to vector<8x16x4xf32>
    %c0_18 = arith.constant 0 : index
    %c0_19 = arith.constant 0 : index
    %55 = vector.load %arg6[%c0_18, %c0_19] : memref<1x4xf32, #tpu.memory_space<vmem>>, vector<1x4xf32>
    %56 = vector.shape_cast %55 : vector<1x4xf32> to vector<1x1x4xf32>
    %57 = vector.broadcast %56 : vector<1x1x4xf32> to vector<8x16x4xf32>
    %58 = arith.mulf %54, %57 : vector<8x16x4xf32>
    %cst_20 = arith.constant dense<0.000000e+00> : vector<8x16xf32>
    %59 = vector.multi_reduction <add>, %58, %cst_20 [2] : vector<8x16x4xf32> to vector<8x16xf32>
    %c0_21 = arith.constant 0 : index
    %c0_22 = arith.constant 0 : index
    %60 = vector.load %arg7[%c0_21, %c0_22] : memref<1x1xf32, #tpu.memory_space<vmem>>, vector<1x1xf32>
    %61 = vector.broadcast %60 : vector<1x1xf32> to vector<8x16xf32>
    %62 = arith.addf %59, %61 : vector<8x16xf32>
    %63 = arith.negf %62 : vector<8x16xf32>
    %64 = math.exp %63 : vector<8x16xf32>
    %cst_23 = arith.constant 1.000000e+00 : f32
    %65 = vector.broadcast %cst_23 : f32 to vector<8x16xf32>
    %66 = arith.addf %65, %64 : vector<8x16xf32>
    %67 = arith.divf %65, %66 : vector<8x16xf32>
    %c0_24 = arith.constant 0 : index
    %c0_25 = arith.constant 0 : index
    %68 = vector.load %arg8[%c0_24, %c0_25] : memref<8x16xf32, #tpu.memory_space<vmem>>, vector<8x16xf32>
    tpu.vector_store %arg8[%c0_24, %c0_25], %67 {strides = array<i32>} : memref<8x16xf32, #tpu.memory_space<vmem>>, vector<8x16xf32>,
    return
  }
  func.func @transform_0(%arg0: i32) -> (i32, i32, i32) {
    %c0_i32 = arith.constant 0 : i32
    %c0_i32_0 = arith.constant 0 : i32
    %c0_i32_1 = arith.constant 0 : i32
    return %arg0, %c0_i32, %c0_i32_0 : i32, i32, i32
  }
  func.func @transform_1(%arg0: i32) -> (i32, i32) {
    %c0_i32 = arith.constant 0 : i32
    %c0_i32_0 = arith.constant 0 : i32
    %c0_i32_1 = arith.constant 0 : i32
    return %c0_i32, %c0_i32_0 : i32, i32
  }
  func.func @transform_2(%arg0: i32) -> (i32, i32) {
    %c0_i32 = arith.constant 0 : i32
    %c0_i32_0 = arith.constant 0 : i32
    %c0_i32_1 = arith.constant 0 : i32
    return %c0_i32, %c0_i32_0 : i32, i32
  }
  func.func @transform_3(%arg0: i32) -> (i32, i32) {
    %c0_i32 = arith.constant 0 : i32
    %c0_i32_0 = arith.constant 0 : i32
    %c0_i32_1 = arith.constant 0 : i32
    return %c0_i32, %c0_i32_0 : i32, i32
  }
  func.func @transform_4(%arg0: i32) -> (i32, i32) {
    %c0_i32 = arith.constant 0 : i32
    %c0_i32_0 = arith.constant 0 : i32
    %c0_i32_1 = arith.constant 0 : i32
    return %c0_i32, %c0_i32_0 : i32, i32
  }
  func.func @transform_5(%arg0: i32) -> (i32, i32) {
    %c0_i32 = arith.constant 0 : i32
    %c0_i32_0 = arith.constant 0 : i32
    %c0_i32_1 = arith.constant 0 : i32
    return %c0_i32, %c0_i32_0 : i32, i32
  }
  func.func @transform_6(%arg0: i32) -> (i32, i32) {
    %c0_i32 = arith.constant 0 : i32
    %c0_i32_0 = arith.constant 0 : i32
    %c0_i32_1 = arith.constant 0 : i32
    return %c0_i32, %c0_i32_0 : i32, i32
  }
  func.func @transform_7(%arg0: i32) -> (i32, i32) {
    %c0_i32 = arith.constant 0 : i32
    %c0_i32_0 = arith.constant 0 : i32
    return %arg0, %c0_i32 : i32, i32
  }
}

module attributes {stable_mosaic.version = 11 : i64} {
  func.func @_stage1_kernel(%arg0: i32, %arg1: memref<8x16x64xf32, #tpu.memory_space<vmem>>, %arg2: memref<1x64xf32, #tpu.memory_space<vmem>>, %arg3: memref<1x64xf32, #tpu.memory_space<vmem>>, %arg4: memref<64x48xbf16, #tpu.memory_space<vmem>>, %arg5: memref<1x16xf32, #tpu.memory_space<vmem>>, %arg6: memref<8x16x16xf32, #tpu.memory_space<vmem>>, %arg7: memref<1x1x16xf32, #tpu.memory_space<vmem>>, %arg8: memref<1x1x16xf32, #tpu.memory_space<vmem>>) attributes {dimension_semantics = [#tpu.dimension_semantics<parallel>], iteration_bounds = array<i64: 2>, scalar_prefetch = 0 : i64, scratch_operands = 0 : i64, tpu.core_type = #tpu.core_type<tc>, window_params = [{transform_indices = @transform_0, window_bounds = array<i64: 8, 16, 64>}, {pipeline_mode = #tpu.pipeline_mode<synchronous>, transform_indices = @transform_1, window_bounds = array<i64: 1, 64>}, {pipeline_mode = #tpu.pipeline_mode<synchronous>, transform_indices = @transform_2, window_bounds = array<i64: 1, 64>}, {pipeline_mode = #tpu.pipeline_mode<synchronous>, transform_indices = @transform_3, window_bounds = array<i64: 64, 48>}, {pipeline_mode = #tpu.pipeline_mode<synchronous>, transform_indices = @transform_4, window_bounds = array<i64: 1, 16>}, {transform_indices = @transform_5, window_bounds = array<i64: 8, 16, 16>}, {transform_indices = @transform_6, window_bounds = array<i64: 1, 1, 16>}, {transform_indices = @transform_7, window_bounds = array<i64: 1, 1, 16>}]} {
    %c0 = arith.constant 0 : index
    %c0_0 = arith.constant 0 : index
    %c0_1 = arith.constant 0 : index
    %0 = vector.load %arg1[%c0, %c0_0, %c0_1] : memref<8x16x64xf32, #tpu.memory_space<vmem>>, vector<8x16x64xf32>
    %c0_2 = arith.constant 0 : index
    %c0_3 = arith.constant 0 : index
    %1 = vector.load %arg2[%c0_2, %c0_3] : memref<1x64xf32, #tpu.memory_space<vmem>>, vector<1x64xf32>
    %2 = vector.shape_cast %1 : vector<1x64xf32> to vector<1x1x64xf32>
    %3 = vector.broadcast %2 : vector<1x1x64xf32> to vector<8x16x64xf32>
    %4 = arith.mulf %0, %3 : vector<8x16x64xf32>
    %c0_4 = arith.constant 0 : index
    %c0_5 = arith.constant 0 : index
    %5 = vector.load %arg3[%c0_4, %c0_5] : memref<1x64xf32, #tpu.memory_space<vmem>>, vector<1x64xf32>
    %6 = vector.shape_cast %5 : vector<1x64xf32> to vector<1x1x64xf32>
    %7 = vector.broadcast %6 : vector<1x1x64xf32> to vector<8x16x64xf32>
    %8 = arith.addf %4, %7 : vector<8x16x64xf32>
    %9 = arith.truncf %8 : vector<8x16x64xf32> to vector<8x16x64xbf16>
    %10 = vector.shape_cast %9 : vector<8x16x64xbf16> to vector<128x64xbf16>
    %c0_6 = arith.constant 0 : index
    %c0_7 = arith.constant 0 : index
    %11 = vector.load %arg4[%c0_6, %c0_7] : memref<64x48xbf16, #tpu.memory_space<vmem>>, vector<64x48xbf16>
    %cst = arith.constant dense<0.000000e+00> : vector<128x48xf32>
    %12 = tpu.matmul %10, %11, %cst {dimension_numbers = #tpu.dot_dimension_numbers<[1], [0], [0], [1], [0, 0, 1, 1], [], []>} : vector<128x64xbf16>, vector<64x48xbf16>, vector<128x48xf32> -> vector<128x48xf32>
    %13 = vector.extract_strided_slice %12 {offsets = [0, 0], sizes = [128, 16], strides = [1, 1]} : vector<128x48xf32> to vector<128x16xf32>
    %14 = vector.extract_strided_slice %12 {offsets = [0, 16], sizes = [128, 16], strides = [1, 1]} : vector<128x48xf32> to vector<128x16xf32>
    %15 = vector.extract_strided_slice %12 {offsets = [0, 32], sizes = [128, 16], strides = [1, 1]} : vector<128x48xf32> to vector<128x16xf32>
    %16 = tpu.iota {dimensions = array<i32: 0>} : vector<128x1xi32>
    %c16_i32 = arith.constant 16 : i32
    %c0_i32 = arith.constant 0 : i32
    %17 = arith.cmpi eq, %c16_i32, %c0_i32 : i32
    %c1_i32 = arith.constant 1 : i32
    %18 = arith.select %17, %c1_i32, %c16_i32 : i32
    %19 = vector.broadcast %18 : i32 to vector<128x1xi32>
    %20 = arith.remsi %16, %19 : vector<128x1xi32>
    %c0_i32_8 = arith.constant 0 : i32
    %21 = vector.broadcast %c0_i32_8 : i32 to vector<128x1xi32>
    %22 = arith.cmpi ne, %20, %21 : vector<128x1xi32>
    %c0_i32_9 = arith.constant 0 : i32
    %23 = vector.broadcast %c0_i32_9 : i32 to vector<128x1xi32>
    %24 = arith.cmpi slt, %20, %23 : vector<128x1xi32>
    %c0_i32_10 = arith.constant 0 : i32
    %25 = arith.cmpi slt, %18, %c0_i32_10 : i32
    %26 = vector.broadcast %25 : i1 to vector<128x1xi1>
    %27 = vector.broadcast %26 : vector<128x1xi1> to vector<128x1xi1>
    %28 = arith.xori %24, %27 : vector<128x1xi1>
    %29 = arith.andi %28, %22 : vector<128x1xi1>
    %30 = vector.broadcast %18 : i32 to vector<128x1xi32>
    %31 = arith.addi %20, %30 : vector<128x1xi32>
    %32 = arith.select %29, %31, %20 : vector<128x1xi1>, vector<128x1xi32>
    %c0_11 = arith.constant 0 : index
    %c0_12 = arith.constant 0 : index
    %33 = vector.load %arg5[%c0_11, %c0_12] : memref<1x16xf32, #tpu.memory_space<vmem>>, vector<1x16xf32>
    %34 = vector.broadcast %33 : vector<1x16xf32> to vector<128x16xf32>
    %35 = arith.addf %14, %34 : vector<128x16xf32>
    %c0_i32_13 = arith.constant 0 : i32
    %36 = vector.broadcast %c0_i32_13 : i32 to vector<128x1xi32>
    %37 = arith.cmpi eq, %32, %36 : vector<128x1xi32>
    %c1_i32_14 = arith.constant 1 : i32
    %38 = tpu.dynamic_rotate %13 by %c1_i32_14 dim 0 : vector<128x16xf32>, i32 -> vector<128x16xf32>
    %cst_15 = arith.constant 0.000000e+00 : f32
    %39 = vector.shape_cast %37 : vector<128x1xi1> to vector<128x1xi1>
    %40 = vector.broadcast %39 : vector<128x1xi1> to vector<128x16xi1>
    %41 = vector.broadcast %cst_15 : f32 to vector<128x16xf32>
    %42 = arith.select %40, %41, %38 : vector<128x16xi1>, vector<128x16xf32>
    %43 = arith.addf %35, %42 : vector<128x16xf32>
    %c15_i32 = arith.constant 15 : i32
    %44 = vector.broadcast %c15_i32 : i32 to vector<128x1xi32>
    %45 = arith.cmpi eq, %32, %44 : vector<128x1xi32>
    %c127_i32 = arith.constant 127 : i32
    %46 = tpu.dynamic_rotate %15 by %c127_i32 dim 0 : vector<128x16xf32>, i32 -> vector<128x16xf32>
    %cst_16 = arith.constant 0.000000e+00 : f32
    %47 = vector.shape_cast %45 : vector<128x1xi1> to vector<128x1xi1>
    %48 = vector.broadcast %47 : vector<128x1xi1> to vector<128x16xi1>
    %49 = vector.broadcast %cst_16 : f32 to vector<128x16xf32>
    %50 = arith.select %48, %49, %46 : vector<128x16xi1>, vector<128x16xf32>
    %51 = arith.addf %43, %50 : vector<128x16xf32>
    %cst_17 = arith.constant 0.000000e+00 : f32
    %52 = vector.broadcast %cst_17 : f32 to vector<128x16xf32>
    %53 = arith.maximumf %51, %52 : vector<128x16xf32>
    %54 = vector.shape_cast %53 : vector<128x16xf32> to vector<8x16x16xf32>
    %c0_18 = arith.constant 0 : index
    %c0_19 = arith.constant 0 : index
    %c0_20 = arith.constant 0 : index
    %55 = vector.load %arg6[%c0_18, %c0_19, %c0_20] : memref<8x16x16xf32, #tpu.memory_space<vmem>>, vector<8x16x16xf32>
    tpu.vector_store %arg6[%c0_18, %c0_19, %c0_20], %54 {strides = array<i32>} : memref<8x16x16xf32, #tpu.memory_space<vmem>>, vector<8x16x16xf32>,
    %cst_21 = arith.constant dense<0.000000e+00> : vector<16xf32>
    %56 = vector.multi_reduction <add>, %53, %cst_21 [0] : vector<128x16xf32> to vector<16xf32>
    %57 = vector.shape_cast %56 : vector<16xf32> to vector<1x16xf32>
    %58 = vector.shape_cast %57 : vector<1x16xf32> to vector<1x1x16xf32>
    %c0_22 = arith.constant 0 : index
    %c0_23 = arith.constant 0 : index
    %c0_24 = arith.constant 0 : index
    %59 = vector.load %arg7[%c0_22, %c0_23, %c0_24] : memref<1x1x16xf32, #tpu.memory_space<vmem>>, vector<1x1x16xf32>
    tpu.vector_store %arg7[%c0_22, %c0_23, %c0_24], %58 {strides = array<i32>} : memref<1x1x16xf32, #tpu.memory_space<vmem>>, vector<1x1x16xf32>,
    %60 = arith.mulf %53, %53 : vector<128x16xf32>
    %cst_25 = arith.constant dense<0.000000e+00> : vector<16xf32>
    %61 = vector.multi_reduction <add>, %60, %cst_25 [0] : vector<128x16xf32> to vector<16xf32>
    %62 = vector.shape_cast %61 : vector<16xf32> to vector<1x16xf32>
    %63 = vector.shape_cast %62 : vector<1x16xf32> to vector<1x1x16xf32>
    %c0_26 = arith.constant 0 : index
    %c0_27 = arith.constant 0 : index
    %c0_28 = arith.constant 0 : index
    %64 = vector.load %arg8[%c0_26, %c0_27, %c0_28] : memref<1x1x16xf32, #tpu.memory_space<vmem>>, vector<1x1x16xf32>
    tpu.vector_store %arg8[%c0_26, %c0_27, %c0_28], %63 {strides = array<i32>} : memref<1x1x16xf32, #tpu.memory_space<vmem>>, vector<1x1x16xf32>,
    return
  }
  func.func @transform_0(%arg0: i32) -> (i32, i32, i32) {
    %c0_i32 = arith.constant 0 : i32
    %c0_i32_0 = arith.constant 0 : i32
    %c0_i32_1 = arith.constant 0 : i32
    return %arg0, %c0_i32, %c0_i32_0 : i32, i32, i32
  }
  func.func @transform_1(%arg0: i32) -> (i32, i32) {
    %c0_i32 = arith.constant 0 : i32
    %c0_i32_0 = arith.constant 0 : i32
    %c0_i32_1 = arith.constant 0 : i32
    return %c0_i32, %c0_i32_0 : i32, i32
  }
  func.func @transform_2(%arg0: i32) -> (i32, i32) {
    %c0_i32 = arith.constant 0 : i32
    %c0_i32_0 = arith.constant 0 : i32
    %c0_i32_1 = arith.constant 0 : i32
    return %c0_i32, %c0_i32_0 : i32, i32
  }
  func.func @transform_3(%arg0: i32) -> (i32, i32) {
    %c0_i32 = arith.constant 0 : i32
    %c0_i32_0 = arith.constant 0 : i32
    %c0_i32_1 = arith.constant 0 : i32
    return %c0_i32, %c0_i32_0 : i32, i32
  }
  func.func @transform_4(%arg0: i32) -> (i32, i32) {
    %c0_i32 = arith.constant 0 : i32
    %c0_i32_0 = arith.constant 0 : i32
    %c0_i32_1 = arith.constant 0 : i32
    return %c0_i32, %c0_i32_0 : i32, i32
  }
  func.func @transform_5(%arg0: i32) -> (i32, i32, i32) {
    %c0_i32 = arith.constant 0 : i32
    %c0_i32_0 = arith.constant 0 : i32
    %c0_i32_1 = arith.constant 0 : i32
    return %arg0, %c0_i32, %c0_i32_0 : i32, i32, i32
  }
  func.func @transform_6(%arg0: i32) -> (i32, i32, i32) {
    %c0_i32 = arith.constant 0 : i32
    %c0_i32_0 = arith.constant 0 : i32
    %c0_i32_1 = arith.constant 0 : i32
    return %arg0, %c0_i32, %c0_i32_0 : i32, i32, i32
  }
  func.func @transform_7(%arg0: i32) -> (i32, i32, i32) {
    %c0_i32 = arith.constant 0 : i32
    %c0_i32_0 = arith.constant 0 : i32
    %c0_i32_1 = arith.constant 0 : i32
    return %arg0, %c0_i32, %c0_i32_0 : i32, i32, i32
  }
}

</mosaic_0001>

<bundles_post_ra>
// kernel: conv_baseline_forward.3
= control target key start
LH: loop header
LB: loop body
LE: loop exit
PB: predicated region body
PF: predicated region fallthrough
CT: control target
= control target key end

     0   :  { %s1779_s26 = smov 0   ;;  %s2193_s0 = inlined_call_operand.vmem [shape: f32[16,16,16], index: 0, kind: input, shape index: {}]   ;;  %s2194_s1 = inlined_call_operand.vmem [shape: f32[1,16], index: 1, kind: input, shape index: {}]   ;;  %s2195_s2 = inlined_call_operand.vmem [shape: f32[1,16], index: 2, kind: input, shape index: {}]   ;;  %s2196_s3 = inlined_call_operand.vmem [shape: bf16[16,12], index: 3, kind: input, shape index: {}]   ;;  %s2197_s4 = inlined_call_operand.vmem [shape: f32[1,4], index: 4, kind: input, shape index: {}]   ;;  %s2198_s5 = inlined_call_operand.vmem [shape: f32[1,4], index: 5, kind: input, shape index: {}]   ;;  %s2199_s6 = inlined_call_operand.<no memory space> [shape: f32[1,1], index: 6, kind: input, shape index: {}]   ;;  %s2200_s7 = inlined_call_operand.vmem [shape: f32[16,16], index: 7, kind: output, shape index: {}]  }
   0x1   :  { %v12_v0 = vstv %s2199_s6 }
   0x2   :  { %13 = vst [vmem:[#allocation2] sm:$0x1] %v12_v0 }
   0x3 LB: > { %s1785_s27 = sadd.s32 4294967295, %s1730_s26   ;;  %p1578_p0 = scmp.ge.s32.totalorder %s1730_s26, 1  ;;  %s1730_s26 = sphi %s1779_s26, %s19_s26  }
   0x4   : > { %p241_p1 = scmp.lt.s32.totalorder %s1730_s26, 3 }
   0x6   : > { %p242_p2 = pnand %p1578_p0, %p241_p1 }
   0x7   : > { %v1659_v1 = vld [vmem:[%s2196_s3] sm:$0xff] (!%p242_p2)   ;;  %s1579_s6 = sshll.u32 (!%p242_p2), %s1785_s27, 3  ;;  %s1732_s9 = smov (!%p242_p2), 4   ;;  %vm363_vm0 = vcmask (!%p242_p2), 130048   ;;  %v485_v61 = vlaneseq (!%p242_p2) }
   0x8   : > { %245 = sbr.rel (%p242_p2) target bundleno = 843 (0x34b), region = 48  ;;  %p274_p3 = scmp.lt.s32.totalorder (!%p242_p2), %s1579_s6, 15  ;;  %1625 = vmatprep.subr.bf16.mxu0 (!%p242_p2), %v1659_v1  ;;  %1643 = vmatprep.subr.bf16.mxu1 (!%p242_p2), %v1659_v1  ;;  %v1594_v2 = vld [vmem:[%s2197_s4] ss:$0 sm:$0xff] (!%p242_p2) }
   0x9   : > { %1626 = vmatpush3.bf16.msra.mxu0 (!%p242_p2), %v1659_v1  ;;  %1644 = vmatpush3.bf16.msra.mxu1 (!%p242_p2), %v1659_v1  ;;  %v1583_v3 = vld [vmem:[%s2194_s1] ss:$0 sm:$0xff] (!%p242_p2)  ;;  %v1835_v63 = vshrl.u32 (!%p242_p2), %v485_v61, 7  ;;  %s1733_s18 = smov (!%p242_p2), 120   ;;  %s1734_s21 = smov (!%p242_p2), 124  }
   0xa   : > { %700 = vrot.lane.b32.xlu0 (!%p242_p2), %v1594_v2, %s1732_s9  ;;  %v1584_v4 = vld [vmem:[%s2195_s2] ss:$0 sm:$0xff] (!%p242_p2)  ;;  %p280_p4 = scmp.lt.s32.totalorder (!%p242_p2), %s1785_s27, 1 }
   0xb   : > { %vm751_vm1 = vcmp.lt.s32.totalorder (!%p242_p2), %v1835_v63, 1  ;;  %vm992_vm10 = vcmp.lt.s32.totalorder (!%p242_p2), %v1835_v63, 7 }
   0xf   : > { %s2202_s6 = smov (!%p274_p3, %s1579_s6), 15  ;;  %s2204_s27 = smov (!%p280_p4, %s1785_s27), 1 }
  0x10   : > { %s1615_s10 = sshll.u32 %s2202_s6, 4  ;;  %s1582_s22 = sshll.u32 %s2204_s27, 3 }
  0x11   : > { %s1803_s15 = scalar_lea.vmem %s2193_s0, %s1615_s10  ;;  %s283_s25 = scalar_lea.vmem %s2200_s7, %s1582_s22 }
  0x12   : > { %v285_v5 = vld [vmem:[%s1803_s15] sm:$0xff]  ;;  %v286_v6 = vld [vmem:[%s1803_s15 + $0x8] sm:$0xff]  ;;  %v287_v12 = vld [vmem:[%s1803_s15 + $0x10] sm:$0xff] }
  0x13   : > { %v293_v7 = vld [vmem:[%s1803_s15 + $0x40] sm:$0xff]  ;;  %v308_v8 = vmul.f32 %v1583_v3, %v285_v5  ;;  %v309_v9 = vmul.f32 %v1583_v3, %v286_v6  ;;  %v294_v10 = vld [vmem:[%s1803_s15 + $0x48] sm:$0xff]  ;;  %v288_v13 = vld [vmem:[%s1803_s15 + $0x18] sm:$0xff]  ;;  %v310_v15 = vmul.f32 %v1583_v3, %v287_v12 }
  0x14   : > { %v316_v11 = vmul.f32 %v1583_v3, %v293_v7  ;;  %v317_v14 = vmul.f32 %v1583_v3, %v294_v10  ;;  %v311_v16 = vmul.f32 %v1583_v3, %v288_v13  ;;  %v295_v17 = vld [vmem:[%s1803_s15 + $0x50] sm:$0xff]  ;;  %v296_v18 = vld [vmem:[%s1803_s15 + $0x58] sm:$0xff]  ;;  %v289_v19 = vld [vmem:[%s1803_s15 + $0x20] sm:$0xff] }
  0x15   : > { %v331_v20 = vadd.f32 %v1584_v4, %v308_v8  ;;  %v332_v21 = vadd.f32 %v1584_v4, %v309_v9  ;;  %v318_v23 = vmul.f32 %v1583_v3, %v295_v17  ;;  %v290_v24 = vld [vmem:[%s1803_s15 + $0x28] sm:$0xff]  ;;  %v297_v25 = vld [vmem:[%s1803_s15 + $0x60] sm:$0xff]  ;;  %v333_v27 = vadd.f32 %v1584_v4, %v310_v15  ;;  %v291_v31 = vld [vmem:[%s1803_s15 + $0x30] sm:$0xff] }
  0x16   : > { %v339_v22 = vadd.f32 %v1584_v4, %v316_v11  ;;  %v340_v26 = vadd.f32 %v1584_v4, %v317_v14  ;;  %v334_v28 = vadd.f32 %v1584_v4, %v311_v16  ;;  %v319_v29 = vmul.f32 %v1583_v3, %v296_v18  ;;  %v298_v30 = vld [vmem:[%s1803_s15 + $0x68] sm:$0xff]  ;;  %v292_v36 = vld [vmem:[%s1803_s15 + $0x38] sm:$0xff]  ;;  %v299_v41 = vld [vmem:[%s1803_s15 + $0x70] sm:$0xff] }
  0x17   : > { %v347_v32 = vpack.c.bf16 %v332_v21, %v331_v20  ;;  %v341_v33 = vadd.f32 %v1584_v4, %v318_v23  ;;  %v312_v34 = vmul.f32 %v1583_v3, %v289_v19  ;;  %v313_v35 = vmul.f32 %v1583_v3, %v290_v24  ;;  %v300_v46 = vld [vmem:[%s1803_s15 + $0x78] sm:$0xff] }
  0x18   : > { %v351_v37 = vpack.c.bf16 %v340_v26, %v339_v22  ;;  %v348_v38 = vpack.c.bf16 %v334_v28, %v333_v27  ;;  %v342_v39 = vadd.f32 %v1584_v4, %v319_v29  ;;  %v320_v40 = vmul.f32 %v1583_v3, %v297_v25 }
  0x19   : > { %1627 = vmatprep.mubr.msk.bf16.mxu0 %vm363_vm0, %v347_v32  ;;  %v335_v42 = vadd.f32 %v1584_v4, %v312_v34  ;;  %v336_v43 = vadd.f32 %v1584_v4, %v313_v35  ;;  %v321_v44 = vmul.f32 %v1583_v3, %v298_v30  ;;  %v314_v45 = vmul.f32 %v1583_v3, %v291_v31 }
  0x1a   : > { %1635 = vmatprep.mubr.msk.bf16.mxu1 %vm363_vm0, %v351_v37  ;;  %1628 = vmatmul.mubr.msk.bf16.vlgmr.msra.gmra.mrb[0].mxu0 %vm363_vm0, %v348_v38  ;;  %v352_v47 = vpack.c.bf16 %v342_v39, %v341_v33  ;;  %v343_v48 = vadd.f32 %v1584_v4, %v320_v40  ;;  %v315_v49 = vmul.f32 %v1583_v3, %v292_v36  ;;  %v488_v18 = vadd.s32 16, %v1835_v63 }
  0x1b   : > { %v349_v50 = vpack.c.bf16 %v336_v43, %v335_v42  ;;  %v344_v51 = vadd.f32 %v1584_v4, %v321_v44  ;;  %v337_v52 = vadd.f32 %v1584_v4, %v314_v45  ;;  %v322_v53 = vmul.f32 %v1583_v3, %v299_v41 }
  0x1c   : > { %1636 = vmatmul.mubr.msk.bf16.vlgmr.msra.gmra.mrb[0].mxu1 %vm363_vm0, %v352_v47  ;;  %v338_v54 = vadd.f32 %v1584_v4, %v315_v49  ;;  %v323_v55 = vmul.f32 %v1583_v3, %v300_v46  ;;  %v520_v31 = vand.u32 15, %v488_v18 }
  0x1d   : > { %1631 = vmatprep.mubr.msk.bf16.mxu0 %vm363_vm0, %v349_v50  ;;  %v353_v56 = vpack.c.bf16 %v344_v51, %v343_v48  ;;  %v345_v57 = vadd.f32 %v1584_v4, %v322_v53  ;;  %v496_v50 = vadd.s32 80, %v1835_v63 }
  0x1e   : > { %v350_v58 = vpack.c.bf16 %v338_v54, %v337_v52  ;;  %v346_v59 = vadd.f32 %v1584_v4, %v323_v55  ;;  %vm721_vm2 = vcmp.eq.s32.totalorder %v520_v31, 0  ;;  %v490_v52 = vadd.s32 32, %v1835_v63 }
  0x1f   : > { %1639 = vmatprep.mubr.msk.bf16.mxu1 %vm363_vm0, %v353_v56  ;;  %v576_v51 = vand.u32 15, %v496_v50  ;;  %v498_v55 = vadd.s32 96, %v1835_v63  ;;  %v1595_v56 = vld [vmem:[%s2198_s5] ss:$0 sm:$0xff] }
  0x20   : > { %v354_v60 = vpack.c.bf16 %v346_v59, %v345_v57  ;;  %v534_v54 = vand.u32 15, %v490_v52  ;;  %v506_v59 = vand.u32 15, %v1835_v63 }
  0x21   : > { %vm729_vm3 = vcmp.eq.s32.totalorder %v576_v51, 0  ;;  %v590_v57 = vand.u32 15, %v498_v55 }
  0x22   : > { %1632 = vmatmul.mubr.msk.bf16.gmra.mrb[4].mxu0 %vm363_vm0, %v350_v58  ;;  %vm723_vm4 = vcmp.eq.s32.totalorder %v534_v54, 0  ;;  %vm719_vm6 = vcmp.eq.s32.totalorder %v506_v59, 0  ;;  %v497_v59 = vadd.s32 88, %v1835_v63 }
  0x23   : > { %vm731_vm5 = vcmp.eq.s32.totalorder %v590_v57, 0 }
  0x24   : > { %1640 = vmatmul.mubr.msk.bf16.gmra.mrb[4].mxu1 %vm363_vm0, %v354_v60  ;;  %v494_v60 = vadd.s32 64, %v1835_v63 }
  0xed   : > { %v1832_v62 = vpop.f32.mrb[0].mxu0 }
  0xee   : > { %932 = vrot.lane.b32.xlu0 %v1832_v62, %s1733_s18  ;;  %v1839_v0 = vpop.f32.mrb[1].mxu0  ;;  %v737_v3 = vrot.slane %v1832_v62, 7 }
  0xef   : > { %v1841_v1 = vpop.f32.mrb[0].mxu1  ;;  %v1843_v2 = vpop.f32.mrb[2].mxu0  ;;  %v735_v8 = vrot.slane %v1839_v0, 7 }
  0xf0   : > { %v745_v4 = vrot.slane %v1841_v1, 7  ;;  %v738_v5 = vrot.slane %v1843_v2, 7  ;;  %v1849_v6 = vpop.f32.mrb[1].mxu1  ;;  %934 = vrot.lane.b32.xlu1 %v1843_v2, %s1733_s18  ;;  %v1853_v7 = vpop.f32.mrb[3].mxu0 }
  0xf1   : > { %v743_v9 = vrot.slane %v1849_v6, 7  ;;  %v1857_v10 = vpop.f32.mrb[2].mxu1  ;;  %v736_v11 = vrot.slane %v1853_v7, 7 }
  0xf2   : > { %v746_v12 = vrot.slane %v1857_v10, 7  ;;  %v1861_v13 = vpop.f32.mrb[3].mxu1  ;;  %948 = vrot.lane.b32.xlu0 %v1841_v1, %s1733_s18  ;;  %v764_v14 = vsel %vm751_vm1, %v737_v3, %v738_v5 }
  0xf3   : > { %v744_v15 = vrot.slane %v1861_v13, 7  ;;  %v765_v16 = vsel %vm751_vm1, %v736_v11, %v737_v3  ;;  %v766_v17 = vsel %vm751_vm1, %v735_v8, %v736_v11  ;;  %v500_v11 = vadd.s32 112, %v1835_v63 }
  0xf4   : > { %950 = vrot.lane.b32.xlu1 %v1857_v10, %s1733_s18  ;;  %v756_v19 = vsel %vm751_vm1, %v745_v4, %v746_v12  ;;  %v802_v49 = vsel %vm721_vm2, 0.0, %v765_v16 }
  0xf5   : > { %v1877_v20 = vpop.f32.mrb[4].mxu0  ;;  %v757_v21 = vsel %vm751_vm1, %v744_v15, %v745_v4  ;;  %v758_v22 = vsel %vm751_vm1, %v743_v9, %v744_v15  ;;  %v562_v4 = vand.u32 15, %v494_v60 }
  0xf6   : > { %v741_v23 = vrot.slane %v1877_v20, 7  ;;  %928 = vrot.lane.b32.xlu0 %v1839_v0, %s1733_s18  ;;  %v1886_v24 = vpop.f32.mrb[5].mxu0  ;;  %v810_v53 = vsel %vm729_vm3, 0.0, %v757_v21 }
  0xf7   : > { %v1888_v25 = vpop.f32.mrb[4].mxu1  ;;  %v739_v26 = vrot.slane %v1886_v24, 7  ;;  %v1891_v27 = vpop.f32.mrb[6].mxu0  ;;  %vm727_vm7 = vcmp.eq.s32.totalorder %v562_v4, 0 }
  0xf8   : > { %v749_v28 = vrot.slane %v1888_v25, 7  ;;  %v1894_v29 = vpop.f32.mrb[5].mxu1  ;;  %v742_v30 = vrot.slane %v1891_v27, 7  ;;  %946 = vrot.lane.b32.xlu1 %v1861_v13, %s1733_s18  ;;  %v1899_v32 = vpop.f32.mrb[7].mxu0 }
  0xf9   : > { %v747_v33 = vrot.slane %v1894_v29, 7  ;;  %v1902_v34 = vpop.f32.mrb[6].mxu1  ;;  %v740_v35 = vrot.slane %v1899_v32, 7  ;;  %v763_v36 = vsel %vm751_vm1, %v738_v5, %v739_v26  ;;  %v492_v5 = vadd.s32 48, %v1835_v63 }
  0xfa   : > { %v750_v37 = vrot.slane %v1902_v34, 7  ;;  %944 = vrot.lane.b32.xlu0 %v1849_v6, %s1733_s18  ;;  %v1910_v38 = vpop.f32.mrb[7].mxu1  ;;  %v760_v39 = vsel %vm751_vm1, %v741_v23, %v742_v30  ;;  %v759_v40 = vsel %vm751_vm1, %v742_v30, %v743_v9  ;;  %v804_v58 = vsel %vm723_vm4, 0.0, %v763_v36 }
  0xfb   : > { %v748_v41 = vrot.slane %v1910_v38, 7  ;;  %v755_v42 = vsel %vm751_vm1, %v746_v12, %v747_v33  ;;  %v762_v43 = vsel %vm751_vm1, %v739_v26, %v740_v35  ;;  %v761_v47 = vsel %vm751_vm1, %v740_v35, %v741_v23 }
  0xfc   : > { %936 = vrot.lane.b32.xlu1 %v1886_v24, %s1733_s18  ;;  %v752_v44 = vsel %vm751_vm1, %v749_v28, %v750_v37  ;;  %v767_v45 = vsel %vm751_vm1, %v750_v37, %v735_v8  ;;  %v812_v3 = vsel %vm731_vm5, 0.0, %v755_v42  ;;  %v548_v9 = vand.u32 15, %v492_v5 }
  0xfd   : > { %v754_v46 = vsel %vm751_vm1, %v747_v33, %v748_v41  ;;  %v753_v48 = vsel %vm751_vm1, %v748_v41, %v749_v28  ;;  %v800_v8 = vsel %vm719_vm6, 0.0, %v767_v45  ;;  %v808_v12 = vsel %vm727_vm7, 0.0, %v759_v40 }
  0xfe   : > { %930 = vrot.lane.b32.xlu0 %v1853_v7, %s1733_s18  ;;  %vm725_vm8 = vcmp.eq.s32.totalorder %v548_v9, 0  ;;  %v487_v36 = vadd.s32 8, %v1835_v63  ;;  %v495_v40 = vadd.s32 72, %v1835_v63  ;;  %vm1242_vm4 = vcmask 31744  }
  0xff   : > { %v806_v15 = vsel %vm725_vm8, 0.0, %v761_v47  ;;  %vm1440_vm5 = vcmask 130112   ;;  %vm1505_vm6 = vcmask 1041409   ;;  %vm1507_vm7 = vcmask 1042434  }
 0x100   : > { %836 = vrot.lane.b32.xlu1 %v802_v49, %s1732_s9  ;;  %v513_v41 = vand.u32 15, %v487_v36  ;;  %v569_v45 = vand.u32 15, %v495_v40  ;;  %vm1509_vm8 = vcmask 1043459  }
 0x102   : > { %940 = vrot.lane.b32.xlu0 %v1877_v20, %s1733_s18  ;;  %vm897_vm11 = vcmp.eq.s32.totalorder %v513_v41, 15  ;;  %vm905_vm12 = vcmp.eq.s32.totalorder %v569_v45, 15 }
 0x104   : > { %942 = vrot.lane.b32.xlu1 %v1891_v27, %s1733_s18 }
 0x106   : > { %956 = vrot.lane.b32.xlu0 %v1888_v25, %s1733_s18 }
 0x108   : > { %958 = vrot.lane.b32.xlu1 %v1902_v34, %s1733_s18 }
 0x10a   : > { %952 = vrot.lane.b32.xlu0 %v1894_v29, %s1733_s18 }
 0x10c   : > { %938 = vrot.lane.b32.xlu1 %v1899_v32, %s1733_s18 }
 0x10e   : > { %834 = vrot.lane.b32.xlu0 %v766_v17, %s1732_s9  ;;  %v1976_v17 = vpop.permute.xlu0 %700 }
 0x110   : > { %954 = vrot.lane.b32.xlu1 %v1910_v38, %s1733_s18 }
 0x112   : > { %838 = vrot.lane.b32.xlu0 %v764_v14, %s1732_s9  ;;  %v604_v14 = vand.u32 15, %v500_v11 }
 0x114   : > { %852 = vrot.lane.b32.xlu1 %v810_v53, %s1732_s9  ;;  %vm733_vm9 = vcmp.eq.s32.totalorder %v604_v14, 0  ;;  %v493_v14 = vadd.s32 56, %v1835_v63 }
 0x115   : > { %v814_v16 = vsel %vm733_vm9, 0.0, %v753_v48  ;;  %vm1511_vm9 = vcmask 1044484  }
 0x116   : > { %850 = vrot.lane.b32.xlu0 %v758_v22, %s1732_s9 }
 0x118   : > { %1159 = vrot.lane.b32.xlu1 %v1595_v56, %s1732_s9 }
 0x11a   : > { %854 = vrot.lane.b32.xlu0 %v756_v19, %s1732_s9 }
 0x11c   : > { %840 = vrot.lane.b32.xlu1 %v804_v58, %s1732_s9 }
 0x11e   : > { %846 = vrot.lane.b32.xlu0 %v760_v39, %s1732_s9 }
 0x120   : > { %856 = vrot.lane.b32.xlu1 %v812_v3, %s1732_s9 }
 0x122   : > { %862 = vrot.lane.b32.xlu0 %v752_v44, %s1732_s9  ;;  %v705_v44 = vadd.f32 %v1832_v62, %v1976_v17 }
 0x124   : > { %832 = vrot.lane.b32.xlu1 %v800_v8, %s1732_s9 }
 0x126   : > { %842 = vrot.lane.b32.xlu0 %v762_v43, %s1732_s9 }
 0x128   : > { %848 = vrot.lane.b32.xlu1 %v808_v12, %s1732_s9  ;;  %v583_v12 = vand.u32 15, %v497_v59 }
 0x12a   : > { %858 = vrot.lane.b32.xlu0 %v754_v46, %s1732_s9  ;;  %v489_v46 = vadd.s32 24, %v1835_v63  ;;  %vm907_vm14 = vcmp.eq.s32.totalorder %v583_v12, 15 }
 0x12c   : > { %844 = vrot.lane.b32.xlu1 %v806_v15, %s1732_s9  ;;  %v527_v56 = vand.u32 15, %v489_v46 }
 0x12e   : > { %vm899_vm13 = vcmp.eq.s32.totalorder %v527_v56, 15 }
 0x130   : > { %860 = vrot.lane.b32.xlu1 %v814_v16, %s1732_s9 }
 0x160   : > { %v933_v18 = vpop.permute.xlu0 %932 }
 0x161   : > { %v978_v21 = vrot.slane %v933_v18, 1  ;;  %v499_v18 = vadd.s32 104, %v1835_v63 }
 0x162   : > { %v935_v19 = vpop.permute.xlu1 %934 }
 0x163   : > { %v979_v22 = vrot.slane %v935_v19, 1 }
 0x164   : > { %v949_v23 = vpop.permute.xlu0 %948 }
 0x165   : > { %v1005_v26 = vsel %vm992_vm10, %v978_v21, %v979_v22  ;;  %v986_v30 = vrot.slane %v949_v23, 1 }
 0x166   : > { %v1981_v28 = vpop.permute.xlu1 %950  ;;  %1077 = vrot.lane.b32.xlu1 %v1005_v26, %s1732_s9  ;;  %v555_v26 = vand.u32 15, %v493_v14 }
 0x167   : > { %v987_v31 = vrot.slane %v1981_v28, 1 }
 0x168   : > { %v1985_v33 = vpop.permute.xlu0 %928  ;;  %vm903_vm15 = vcmp.eq.s32.totalorder %v555_v26, 15 }
 0x169   : > { %v997_v35 = vsel %vm992_vm10, %v986_v30, %v987_v31  ;;  %v976_v47 = vrot.slane %v1985_v33, 1 }
 0x16a   : > { %v947_v37 = vpop.permute.xlu1 %946  ;;  %1093 = vrot.lane.b32.xlu1 %v997_v35, %s1732_s9 }
 0x16b   : > { %v985_v48 = vrot.slane %v947_v37, 1  ;;  %v597_v37 = vand.u32 15, %v499_v18 }
 0x16c   : > { %v945_v39 = vpop.permute.xlu0 %944 }
 0x16d   : > { %v984_v51 = vrot.slane %v945_v39, 1  ;;  %v998_v58 = vsel %vm992_vm10, %v985_v48, %v986_v30  ;;  %v501_v30 = vadd.s32 120, %v1835_v63  ;;  %vm909_vm1 = vcmp.eq.s32.totalorder %v597_v37, 15 }
 0x16e   : > { %v937_v42 = vpop.permute.xlu1 %936  ;;  %v1050_v8 = vsel %vm905_vm12, 0.0, %v998_v58  ;;  %vm1517_vm12 = vcmask 1047559  }
 0x16f   : > { %v980_v57 = vrot.slane %v937_v42, 1  ;;  %v999_v4 = vsel %vm992_vm10, %v984_v51, %v985_v48 }
 0x170   : > { %v931_v43 = vpop.permute.xlu0 %930 }
 0x171   : > { %v977_v49 = vrot.slane %v931_v43, 1  ;;  %v1004_v11 = vsel %vm992_vm10, %v979_v22, %v980_v57  ;;  %v491_v22 = vadd.s32 40, %v1835_v63 }
 0x172   : > { %v837_v50 = vpop.permute.xlu1 %836 }
 0x173   : > { %v1996_v52 = vadd.f32 %v837_v50, %v705_v44  ;;  %v1007_v53 = vsel %vm992_vm10, %v976_v47, %v977_v49  ;;  %v1006_v62 = vsel %vm992_vm10, %v977_v49, %v978_v21  ;;  %v1044_v21 = vsel %vm899_vm13, 0.0, %v1004_v11 }
 0x174   : > { %v941_v54 = vpop.permute.xlu0 %940  ;;  %1073 = vrot.lane.b32.xlu1 %v1007_v53, %s1732_s9  ;;  %v1042_v55 = vsel %vm897_vm11, 0.0, %v1006_v62  ;;  %v541_v42 = vand.u32 15, %v491_v22  ;;  %v611_v44 = vand.u32 15, %v501_v30  ;;  %vm1515_vm11 = vcmask 1046534  }
 0x175   : > { %1075 = vrot.lane.b32.xlu0 %v1042_v55, %s1732_s9  ;;  %v982_v9 = vrot.slane %v941_v54, 1 }
 0x176   : > { %v943_v60 = vpop.permute.xlu1 %942  ;;  %vm901_vm2 = vcmp.eq.s32.totalorder %v541_v42, 15  ;;  %vm911_vm3 = vcmp.eq.s32.totalorder %v611_v44, 15  ;;  %v712_v44 = vadd.f32 %v1976_v17, %v1861_v13 }
 0x177   : > { %v983_v3 = vrot.slane %v943_v60, 1 }
 0x178   : > { %v957_v5 = vpop.permute.xlu0 %956  ;;  %1089 = vrot.lane.b32.xlu1 %v999_v4, %s1732_s9 }
 0x179   : > { %1091 = vrot.lane.b32.xlu0 %v1050_v8, %s1732_s9  ;;  %v1001_v16 = vsel %vm992_vm10, %v982_v9, %v983_v3  ;;  %v1000_v41 = vsel %vm992_vm10, %v983_v3, %v984_v51  ;;  %v990_v45 = vrot.slane %v957_v5, 1 }
 0x17a   : > { %v959_v15 = vpop.permute.xlu1 %958 }
 0x17b   : > { %v991_v46 = vrot.slane %v959_v15, 1 }
 0x17c   : > { %v953_v19 = vpop.permute.xlu0 %952  ;;  %1085 = vrot.lane.b32.xlu1 %v1001_v16, %s1732_s9  ;;  %v713_v16 = vadd.f32 %v1841_v1, %v1976_v17 }
 0x17d   : > { %v988_v23 = vrot.slane %v953_v19, 1  ;;  %1079 = vrot.lane.b32.xlu0 %v1044_v21, %s1732_s9  ;;  %v1008_v53 = vsel %vm992_vm10, %v991_v46, %v976_v47  ;;  %v993_v56 = vsel %vm992_vm10, %v990_v45, %v991_v46 }
 0x17e   : > { %v939_v28 = vpop.permute.xlu1 %938  ;;  %v1056_v54 = vsel %vm911_vm3, 0.0, %v1008_v53 }
 0x17f   : > { %v981_v35 = vrot.slane %v939_v28, 1  ;;  %v996_v36 = vsel %vm992_vm10, %v987_v31, %v988_v23  ;;  %v1048_v31 = vsel %vm903_vm15, 0.0, %v1000_v41  ;;  %v711_v41 = vadd.f32 %v1976_v17, %v1849_v6 }
 0x180   : > { %v1052_v39 = vsel %vm907_vm14, 0.0, %v996_v36  ;;  %v835_v58 = vpop.permute.xlu0 %834  ;;  %v703_v36 = vadd.f32 %v1976_v17, %v1839_v0  ;;  %v706_v6 = vadd.f32 %v1843_v2, %v1976_v17 }
 0x181   : > { %1095 = vrot.lane.b32.xlu0 %v1052_v39, %s1732_s9  ;;  %v1003_v40 = vsel %vm992_vm10, %v980_v57, %v981_v35  ;;  %v1002_v50 = vsel %vm992_vm10, %v981_v35, %v982_v9 }
 0x182   : > { %v955_v43 = vpop.permute.xlu1 %954  ;;  %1081 = vrot.lane.b32.xlu1 %v1003_v40, %s1732_s9  ;;  %v1046_v62 = vsel %vm901_vm2, 0.0, %v1002_v50 }
 0x183   : > { %v989_v48 = vrot.slane %v955_v43, 1 }
 0x184   : > { %v839_v60 = vpop.permute.xlu0 %838 }
 0x185   : > { %1087 = vrot.lane.b32.xlu0 %v1048_v31, %s1732_s9  ;;  %v994_v49 = vsel %vm992_vm10, %v989_v48, %v990_v45  ;;  %v995_v55 = vsel %vm992_vm10, %v988_v23, %v989_v48  ;;  %vm1513_vm10 = vcmask 1045509  }
 0x186   : > { %v1054_v51 = vsel %vm909_vm1, 0.0, %v994_v49  ;;  %v853_v33 = vpop.permute.xlu1 %852 }
 0x187   : > { %1099 = vrot.lane.b32.xlu1 %v1054_v51, %s1732_s9  ;;  %v890_v19 = vadd.f32 %v853_v33, %v713_v16 }
 0x188   : > { %v851_v4 = vpop.permute.xlu0 %850 }
 0x189   : > { %1083 = vrot.lane.b32.xlu0 %v1046_v62, %s1732_s9  ;;  %v889_v48 = vadd.f32 %v851_v4, %v712_v44 }
 0x18a   : > { %v2049_v57 = vpop.permute.xlu1 %1159 }
 0x18b   : > { %1103 = vrot.lane.b32.xlu1 %v1056_v54, %s1732_s9 }
 0x18c   : > { %v855_v8 = vpop.permute.xlu0 %854 }
 0x18d   : > { %1097 = vrot.lane.b32.xlu0 %v995_v55, %s1732_s9 }
 0x18e   : > { %v2051_v47 = vpop.permute.xlu1 %840 }
 0x190   : > { %v2055_v11 = vpop.permute.xlu0 %846 }
 0x191   : > { %1101 = vrot.lane.b32.xlu0 %v993_v56, %s1732_s9  ;;  %v883_v56 = vadd.f32 %v839_v60, %v706_v6 }
 0x192   : > { %v2053_v59 = vpop.permute.xlu1 %856 }
 0x194   : > { %v2059_v14 = vpop.permute.xlu0 %862 }
 0x196   : > { %v833_v3 = vpop.permute.xlu1 %832 }
 0x197   : > { %v880_v37 = vadd.f32 %v833_v3, %v703_v36 }
 0x198   : > { %v2064_v26 = vpop.permute.xlu0 %842 }
 0x19a   : > { %v849_v5 = vpop.permute.xlu1 %848 }
 0x19b   : > { %v888_v0 = vadd.f32 %v849_v5, %v711_v41  ;;  %v714_v5 = vadd.f32 %v1857_v10, %v1976_v17  ;;  %v710_v10 = vadd.f32 %v1891_v27, %v1976_v17  ;;  %v718_v41 = vadd.f32 %v1902_v34, %v1976_v17 }
 0x19c   : > { %v2071_v1 = vpop.permute.xlu0 %858 }
 0x19d   : > { %v891_v60 = vadd.f32 %v855_v8, %v714_v5  ;;  %v887_v8 = vadd.f32 %v2055_v11, %v710_v10  ;;  %v895_v44 = vadd.f32 %v2059_v14, %v718_v41 }
 0x19e   : > { %v845_v9 = vpop.permute.xlu1 %844 }
 0x1a2   : > { %v2057_v12 = vpop.permute.xlu1 %860 }
 0x1d8   : > { %v1078_v15 = vpop.permute.xlu1 %1077 }
 0x1d9   : > { %v1123_v18 = vadd.f32 %v1078_v15, %v1996_v52  ;;  %v704_v52 = vadd.f32 %v1976_v17, %v1853_v7  ;;  %v709_v7 = vadd.f32 %v1877_v20, %v1976_v17 }
 0x1db   : > { %v1139_v21 = vmax.f32 %v1123_v18, 0.0  ;;  %v881_v39 = vadd.f32 %v835_v58, %v704_v52  ;;  %v886_v13 = vadd.f32 %v845_v9, %v709_v7  ;;  %v707_v9 = vadd.f32 %v1976_v17, %v1886_v24 }
 0x1dc   : > { %v1094_v23 = vpop.permute.xlu1 %1093 }
 0x1dd   : > { %v1164_v22 = vmul.f32 %v2049_v57, %v1139_v21  ;;  %v1131_v28 = vadd.f32 %v1094_v23, %v890_v19  ;;  %v884_v19 = vadd.f32 %v2051_v47, %v707_v9 }
 0x1df   : > { %v1147_v30 = vmax.f32 %v1131_v28, 0.0  ;;  %1198 = vrot.lane.b32.xlu0 %v1164_v22, %s1734_s21 }
 0x1e1   : > { %v1172_v35 = vmul.f32 %v2049_v57, %v1147_v30 }
 0x1e3   : > { %1214 = vrot.lane.b32.xlu0 %v1172_v35, %s1734_s21 }
 0x1e6   : > { %v1074_v40 = vpop.permute.xlu1 %1073 }
 0x1e7   : > { %v1121_v42 = vadd.f32 %v1074_v40, %v880_v37  ;;  %v1076_v43 = vpop.permute.xlu0 %1075  ;;  %v708_v40 = vadd.f32 %v1976_v17, %v1899_v32  ;;  %v716_v32 = vadd.f32 %v1976_v17, %v1910_v38 }
 0x1e8   : > { %v1122_v45 = vadd.f32 %v1076_v43, %v881_v39  ;;  %v715_v43 = vadd.f32 %v1976_v17, %v1894_v29 }
 0x1e9   : > { %v1137_v46 = vmax.f32 %v1121_v42, 0.0  ;;  %v893_v14 = vadd.f32 %v2071_v1, %v716_v32  ;;  %v1735_v1 = vmov 0  }
 0x1ea   : > { %v1138_v31 = vmax.f32 %v1122_v45, 0.0  ;;  %v1090_v49 = vpop.permute.xlu1 %1089  ;;  %v885_v45 = vadd.f32 %v2064_v26, %v708_v40  ;;  %v892_v34 = vadd.f32 %v2053_v59, %v715_v43  ;;  %1657 = vset.pattern.permute.xlu1 %v1735_v1  ;;  %1658 = vset.pattern.permute.xlu0 %v1735_v1 }
 0x1eb   : > { %v1162_v50 = vmul.f32 %v2049_v57, %v1137_v46  ;;  %v1129_v51 = vadd.f32 %v1090_v49, %v888_v0  ;;  %v1092_v53 = vpop.permute.xlu0 %1091  ;;  %v717_v49 = vadd.f32 %v1888_v25, %v1976_v17 }
 0x1ec   : > { %v1163_v62 = vmul.f32 %v2049_v57, %v1138_v31  ;;  %v1130_v54 = vadd.f32 %v1092_v53, %v889_v48 }
 0x1ed   : > { %v1145_v55 = vmax.f32 %v1129_v51, 0.0  ;;  %1194 = vrot.lane.b32.xlu0 %v1162_v50, %s1734_s21  ;;  %v894_v50 = vadd.f32 %v2057_v12, %v717_v49 }
 0x1ee   : > { %v1146_v33 = vmax.f32 %v1130_v54, 0.0  ;;  %1196 = vrot.lane.b32.xlu1 %v1163_v62, %s1734_s21  ;;  %v1086_v58 = vpop.permute.xlu1 %1085 }
 0x1ef   : > { %v1170_v20 = vmul.f32 %v2049_v57, %v1145_v55  ;;  %v1127_v3 = vadd.f32 %v1086_v58, %v886_v13  ;;  %v1080_v4 = vpop.permute.xlu0 %1079 }
 0x1f0   : > { %v1171_v2 = vmul.f32 %v2049_v57, %v1146_v33  ;;  %v1124_v15 = vadd.f32 %v1080_v4, %v883_v56 }
 0x1f1   : > { %v1143_v16 = vmax.f32 %v1127_v3, 0.0  ;;  %1210 = vrot.lane.b32.xlu0 %v1170_v20, %s1734_s21 }
 0x1f2   : > { %v1140_v18 = vmax.f32 %v1124_v15, 0.0  ;;  %1212 = vrot.lane.b32.xlu1 %v1171_v2, %s1734_s21 }
 0x1f3   : > { %v1168_v21 = vmul.f32 %v2049_v57, %v1143_v16  ;;  %v1096_v23 = vpop.permute.xlu0 %1095 }
 0x1f4   : > { %v1165_v22 = vmul.f32 %v2049_v57, %v1140_v18  ;;  %v1132_v28 = vadd.f32 %v1096_v23, %v891_v60  ;;  %v1082_v30 = vpop.permute.xlu1 %1081 }
 0x1f5   : > { %v1125_v24 = vadd.f32 %v1082_v30, %v884_v19  ;;  %1206 = vrot.lane.b32.xlu0 %v1168_v21, %s1734_s21 }
 0x1f6   : > { %v1148_v35 = vmax.f32 %v1132_v28, 0.0  ;;  %1200 = vrot.lane.b32.xlu1 %v1165_v22, %s1734_s21 }
 0x1f7   : > { %v1141_v36 = vmax.f32 %v1125_v24, 0.0  ;;  %v1088_v47 = vpop.permute.xlu0 %1087 }
 0x1f8   : > { %v1173_v52 = vmul.f32 %v2049_v57, %v1148_v35  ;;  %v1128_v37 = vadd.f32 %v1088_v47, %v887_v8 }
 0x1f9   : > { %v1166_v39 = vmul.f32 %v2049_v57, %v1141_v36  ;;  %v1100_v27 = vpop.permute.xlu1 %1099 }
 0x1fa   : > { %v1144_v42 = vmax.f32 %v1128_v37, 0.0  ;;  %1216 = vrot.lane.b32.xlu1 %v1173_v52, %s1734_s21  ;;  %v1134_v51 = vadd.f32 %v1100_v27, %v893_v14 }
 0x1fb   : > { %v1084_v11 = vpop.permute.xlu0 %1083  ;;  %1202 = vrot.lane.b32.xlu0 %v1166_v39, %s1734_s21 }
 0x1fc   : > { %v1169_v0 = vmul.f32 %v2049_v57, %v1144_v42  ;;  %v1126_v48 = vadd.f32 %v1084_v11, %v885_v45  ;;  %v1150_v13 = vmax.f32 %v1134_v51, 0.0  ;;  %v1596_v42 = vld [vmem:[#allocation2] ss:$0 sm:$0xff] }
 0x1fd   : > { %v1104_v46 = vpop.permute.xlu1 %1103 }
 0x1fe   : > { %v1136_v31 = vadd.f32 %v1104_v46, %v895_v44  ;;  %1208 = vrot.lane.b32.xlu1 %v1169_v0, %s1734_s21  ;;  %v1142_v53 = vmax.f32 %v1126_v48, 0.0  ;;  %v1175_v55 = vmul.f32 %v2049_v57, %v1150_v13 }
 0x1ff   : > { %v1098_v29 = vpop.permute.xlu0 %1097 }
 0x200   : > { %v1152_v7 = vmax.f32 %v1136_v31, 0.0  ;;  %v1133_v26 = vadd.f32 %v1098_v29, %v892_v34  ;;  %v1167_v25 = vmul.f32 %v2049_v57, %v1142_v53 }
 0x202   : > { %v1177_v38 = vmul.f32 %v2049_v57, %v1152_v7  ;;  %v1149_v6 = vmax.f32 %v1133_v26, 0.0 }
 0x203   : > { %v1102_v59 = vpop.permute.xlu0 %1101 }
 0x204   : > { %v1174_v62 = vmul.f32 %v2049_v57, %v1149_v6  ;;  %v1135_v54 = vadd.f32 %v1102_v59, %v894_v50  ;;  %1224 = vrot.lane.b32.xlu1 %v1177_v38, %s1734_s21 }
 0x206   : > { %v1151_v17 = vmax.f32 %v1135_v54, 0.0  ;;  %1218 = vrot.lane.b32.xlu0 %v1174_v62, %s1734_s21 }
 0x208   : > { %v1176_v12 = vmul.f32 %v2049_v57, %v1151_v17  ;;  %1204 = vrot.lane.b32.xlu1 %v1167_v25, %s1734_s21 }
 0x20a   : > { %1222 = vrot.lane.b32.xlu0 %v1176_v12, %s1734_s21 }
 0x20c   : > { %1220 = vrot.lane.b32.xlu1 %v1175_v55, %s1734_s21 }
 0x251   : > { %v1199_v56 = vpop.permute.xlu0 %1198 }
 0x252   : > { %v1249_v33 = vsel %vm1242_vm4, %v1199_v56, 0.0 }
 0x253   : > { %1250 = vadd.xlane.f32.xlu0 %v1249_v33 }
 0x255   : > { %v1215_v58 = vpop.permute.xlu0 %1214 }
 0x256   : > { %v1273_v20 = vsel %vm1242_vm4, %v1215_v58, 0.0 }
 0x257   : > { %1274 = vadd.xlane.f32.xlu1 %v1273_v20 }
 0x25f   : > { %v1195_v3 = vpop.permute.xlu0 %1194 }
 0x260   : > { %v1197_v4 = vpop.permute.xlu1 %1196  ;;  %v1243_v5 = vsel %vm1242_vm4, %v1195_v3, 0.0 }
 0x261   : > { %1244 = vadd.xlane.f32.xlu0 %v1243_v5  ;;  %v1246_v60 = vsel %vm1242_vm4, %v1197_v4, 0.0 }
 0x263   : > { %v1211_v2 = vpop.permute.xlu0 %1210 }
 0x264   : > { %v1213_v57 = vpop.permute.xlu1 %1212  ;;  %v1267_v15 = vsel %vm1242_vm4, %v1211_v2, 0.0 }
 0x265   : > { %1268 = vadd.xlane.f32.xlu1 %v1267_v15  ;;  %v1270_v9 = vsel %vm1242_vm4, %v1213_v57, 0.0 }
 0x266   : > { %1271 = vadd.xlane.f32.xlu0 %v1270_v9 }
 0x267   : > { %v1207_v18 = vpop.permute.xlu0 %1206 }
 0x268   : > { %v1201_v16 = vpop.permute.xlu1 %1200  ;;  %v1261_v23 = vsel %vm1242_vm4, %v1207_v18, 0.0 }
 0x269   : > { %1247 = vadd.xlane.f32.xlu1 %v1246_v60  ;;  %v1252_v19 = vsel %vm1242_vm4, %v1201_v16, 0.0 }
 0x26a   : > { %1253 = vadd.xlane.f32.xlu0 %v1252_v19 }
 0x26c   : > { %v1217_v21 = vpop.permute.xlu1 %1216 }
 0x26d   : > { %1262 = vadd.xlane.f32.xlu1 %v1261_v23  ;;  %v1276_v10 = vsel %vm1242_vm4, %v1217_v21, 0.0  ;;  %v1203_v30 = vpop.permute.xlu0 %1202 }
 0x26e   : > { %1277 = vadd.xlane.f32.xlu0 %v1276_v10  ;;  %v1255_v27 = vsel %vm1242_vm4, %v1203_v30, 0.0 }
 0x270   : > { %v1209_v22 = vpop.permute.xlu1 %1208 }
 0x271   : > { %v1264_v28 = vsel %vm1242_vm4, %v1209_v22, 0.0 }
 0x272   : > { %1265 = vadd.xlane.f32.xlu0 %v1264_v28 }
 0x276   : > { %v1225_v24 = vpop.permute.xlu1 %1224 }
 0x277   : > { %v1288_v40 = vsel %vm1242_vm4, %v1225_v24, 0.0 }
 0x278   : > { %v1219_v8 = vpop.permute.xlu0 %1218 }
 0x279   : > { %v1279_v41 = vsel %vm1242_vm4, %v1219_v8, 0.0 }
 0x27a   : > { %v1205_v35 = vpop.permute.xlu1 %1204 }
 0x27b   : > { %v1258_v36 = vsel %vm1242_vm4, %v1205_v35, 0.0 }
 0x27c   : > { %v1223_v47 = vpop.permute.xlu0 %1222  ;;  %1259 = vadd.xlane.f32.xlu0 %v1258_v36 }
 0x27d   : > { %v1285_v52 = vsel %vm1242_vm4, %v1223_v47, 0.0 }
 0x27e   : > { %1286 = vadd.xlane.f32.xlu1 %v1285_v52  ;;  %v1221_v37 = vpop.permute.xlu1 %1220 }
 0x27f   : > { %v1282_v39 = vsel %vm1242_vm4, %v1221_v37, 0.0 }
 0x280   : > { %1283 = vadd.xlane.f32.xlu0 %v1282_v39 }
 0x282   : > { %1256 = vadd.xlane.f32.xlu1 %v1255_v27 }
 0x284   : > { %1289 = vadd.xlane.f32.xlu0 %v1288_v40 }
 0x286   : > { %1280 = vadd.xlane.f32.xlu1 %v1279_v41  ;;  %v1430_v41 = vand.u32 127, %v485_v61 }
 0x297   : > { %1298 = vperm.xlu1 %1657, %v1596_v42  }
 0x2e0   : > { %v1251_v43 = vpop.xlane.xlu0 %1250 }
 0x2e4   : > { %v1275_v11 = vpop.xlane.xlu1 %1274 }
 0x2ee   : > { %v1245_v45 = vpop.xlane.xlu0 %1244 }
 0x2f2   : > { %v1269_v44 = vpop.xlane.xlu1 %1268 }
 0x2f3   : > { %v1272_v46 = vpop.xlane.xlu0 %1271 }
 0x2f6   : > { %v1248_v0 = vpop.xlane.xlu1 %1247 }
 0x2f7   : > { %v1254_v34 = vpop.xlane.xlu0 %1253 }
 0x2fa   : > { %v1263_v32 = vpop.xlane.xlu1 %1262 }
 0x2fb   : > { %v1278_v31 = vpop.xlane.xlu0 %1277 }
 0x2ff   : > { %v1266_v14 = vpop.xlane.xlu0 %1265 }
 0x309   : > { %v1260_v26 = vpop.xlane.xlu0 %1259 }
 0x30b   : > { %v1287_v48 = vpop.xlane.xlu1 %1286 }
 0x30d   : > { %v1284_v12 = vpop.xlane.xlu0 %1283 }
 0x30f   : > { %v1257_v49 = vpop.xlane.xlu1 %1256 }
 0x311   : > { %v1290_v16 = vpop.xlane.xlu0 %1289 }
 0x313   : > { %v1281_v29 = vpop.xlane.xlu1 %1280 }
 0x317   : > { %v1299_v7 = vpop.permute.xlu1 %1298 }
 0x318   : > { %v1301_v50 = vadd.f32 %v1299_v7, %v1245_v45  ;;  %v1302_v51 = vadd.f32 %v1299_v7, %v1248_v0  ;;  %v1303_v53 = vadd.f32 %v1299_v7, %v1251_v43  ;;  %v1304_v38 = vadd.f32 %v1299_v7, %v1254_v34 }
 0x319   : > { %v1305_v6 = vadd.f32 %v1299_v7, %v1257_v49  ;;  %v1306_v59 = vadd.f32 %v1299_v7, %v1260_v26  ;;  %v1307_v62 = vadd.f32 %v1299_v7, %v1263_v32  ;;  %v1308_v17 = vadd.f32 %v1299_v7, %v1266_v14 }
 0x31a   : > { %v1597_v54 = vmul.f32 -1.442695, %v1301_v50  ;;  %v1598_v13 = vmul.f32 -1.442695, %v1302_v51  ;;  %v1599_v25 = vmul.f32 -1.442695, %v1303_v53  ;;  %v1309_v55 = vadd.f32 %v1299_v7, %v1269_v44 }
 0x31b   : > { %v1600_v1 = vmul.f32 -1.442695, %v1304_v38  ;;  %v1601_v56 = vmul.f32 -1.442695, %v1305_v6  ;;  %v1310_v33 = vadd.f32 %v1299_v7, %v1272_v46  ;;  %v1602_v58 = vmul.f32 -1.442695, %v1306_v59 }
 0x31c   : > { %1660 = vpow2.f32 %v1597_v54  ;;  %v1311_v20 = vadd.f32 %v1299_v7, %v1275_v11  ;;  %v1603_v3 = vmul.f32 -1.442695, %v1307_v62  ;;  %v1312_v4 = vadd.f32 %v1299_v7, %v1278_v31 }
 0x31d   : > { %1662 = vpow2.f32 %v1598_v13  ;;  %v1604_v5 = vmul.f32 -1.442695, %v1308_v17  ;;  %v1313_v2 = vadd.f32 %v1299_v7, %v1281_v29  ;;  %v1605_v57 = vmul.f32 -1.442695, %v1309_v55 }
 0x31e   : > { %1664 = vpow2.f32 %v1599_v25  ;;  %v1314_v15 = vadd.f32 %v1299_v7, %v1284_v12  ;;  %v1606_v9 = vmul.f32 -1.442695, %v1310_v33  ;;  %v1315_v60 = vadd.f32 %v1299_v7, %v1287_v48 }
 0x31f   : > { %1666 = vpow2.f32 %v1600_v1  ;;  %v1607_v18 = vmul.f32 -1.442695, %v1311_v20  ;;  %v1316_v19 = vadd.f32 %v1299_v7, %v1290_v16  ;;  %v1608_v21 = vmul.f32 -1.442695, %v1312_v4 }
 0x320   : > { %1668 = vpow2.f32 %v1601_v56  ;;  %v1609_v23 = vmul.f32 -1.442695, %v1313_v2  ;;  %v1610_v10 = vmul.f32 -1.442695, %v1314_v15  ;;  %v1611_v28 = vmul.f32 -1.442695, %v1315_v60 }
 0x321   : > { %1670 = vpow2.f32 %v1602_v58  ;;  %v1612_v24 = vmul.f32 -1.442695, %v1316_v19  ;;  %v1435_v34 = vadd.s32 4294967288, %v1430_v41  ;;  %v2153_v7 = vsub.s32 %v1430_v41, %v1835_v63 }
 0x322   : > { %1672 = vpow2.f32 %v1603_v3 }
 0x323   : > { %1674 = vpow2.f32 %v1604_v5  ;;  %v2156_v51 = vsub.s32 %v1435_v34, %v1835_v63 }
 0x324   : > { %1676 = vpow2.f32 %v1605_v57 }
 0x325   : > { %1678 = vpow2.f32 %v1606_v9 }
 0x326   : > { %v1661_v22 = vpop.eup %1660  ;;  %1680 = vpow2.f32 %v1607_v18 }
 0x327   : > { %v1663_v30 = vpop.eup %1662  ;;  %1682 = vpow2.f32 %v1608_v21  ;;  %v1365_v35 = vadd.f32 1.0, %v1661_v22 }
 0x328   : > { %v1665_v8 = vpop.eup %1664  ;;  %1684 = vpow2.f32 %v1609_v23  ;;  %v1366_v47 = vadd.f32 1.0, %v1663_v30 }
 0x329   : > { %v1667_v36 = vpop.eup %1666  ;;  %1686 = vpow2.f32 %v1610_v10  ;;  %v1367_v37 = vadd.f32 1.0, %v1665_v8 }
 0x32a   : > { %v1669_v52 = vpop.eup %1668  ;;  %1688 = vpow2.f32 %v1611_v28  ;;  %v1368_v27 = vadd.f32 1.0, %v1667_v36 }
 0x32b   : > { %v1671_v39 = vpop.eup %1670  ;;  %1690 = vpow2.f32 %v1612_v24  ;;  %v1369_v42 = vadd.f32 1.0, %v1669_v52 }
 0x32c   : > { %v1673_v40 = vpop.eup %1672  ;;  %1692 = vrcp.f32 %v1365_v35  ;;  %v1370_v43 = vadd.f32 1.0, %v1671_v39 }
 0x32d   : > { %v1675_v11 = vpop.eup %1674  ;;  %1694 = vrcp.f32 %v1366_v47  ;;  %v1371_v45 = vadd.f32 1.0, %v1673_v40 }
 0x32e   : > { %v1677_v44 = vpop.eup %1676  ;;  %1696 = vrcp.f32 %v1367_v37  ;;  %v1372_v46 = vadd.f32 1.0, %v1675_v11 }
 0x32f   : > { %v1679_v0 = vpop.eup %1678  ;;  %1698 = vrcp.f32 %v1368_v27  ;;  %v1373_v48 = vadd.f32 1.0, %v1677_v44 }
 0x330   : > { %v1681_v32 = vpop.eup %1680  ;;  %1700 = vrcp.f32 %v1369_v42  ;;  %v1374_v49 = vadd.f32 1.0, %v1679_v0 }
 0x331   : > { %v1683_v31 = vpop.eup %1682  ;;  %1702 = vrcp.f32 %v1370_v43  ;;  %v1375_v61 = vadd.f32 1.0, %v1681_v32 }
 0x332   : > { %v1685_v29 = vpop.eup %1684  ;;  %1704 = vrcp.f32 %v1371_v45  ;;  %v1376_v26 = vadd.f32 1.0, %v1683_v31 }
 0x333   : > { %v1687_v14 = vpop.eup %1686  ;;  %1706 = vrcp.f32 %v1372_v46  ;;  %v1377_v53 = vadd.f32 1.0, %v1685_v29 }
 0x334   : > { %v1689_v50 = vpop.eup %1688  ;;  %1708 = vrcp.f32 %v1373_v48  ;;  %v1378_v6 = vadd.f32 1.0, %v1687_v14 }
 0x335   : > { %v1691_v38 = vpop.eup %1690  ;;  %1710 = vrcp.f32 %v1374_v49  ;;  %v1379_v62 = vadd.f32 1.0, %v1689_v50 }
 0x336   : > { %v1693_v59 = vpop.eup %1692  ;;  %1712 = vrcp.f32 %v1375_v61  ;;  %v1380_v13 = vadd.f32 1.0, %v1691_v38 }
 0x337   : > { %v1695_v54 = vpop.eup %1694  ;;  %1714 = vrcp.f32 %v1376_v26  ;;  %v1434_v25 = vrot.slane %v1693_v59, %v2153_v7 }
 0x338   : > { %v1697_v17 = vpop.eup %1696  ;;  %1716 = vrcp.f32 %v1377_v53  ;;  %v1439_v63 = vrot.slane %v1695_v54, %v2156_v51 }
 0x339   : > { %v1699_v1 = vpop.eup %1698  ;;  %1718 = vrcp.f32 %v1378_v6  ;;  %v1445_v12 = vrot.slane %v1697_v17, %v2153_v7 }
 0x33a   : > { %v1701_v55 = vpop.eup %1700  ;;  %1720 = vrcp.f32 %v1379_v62  ;;  %v1441_v56 = vsel %vm1440_vm5, %v1439_v63, %v1434_v25  ;;  %v1449_v33 = vrot.slane %v1699_v1, %v2156_v51 }
 0x33b   : > { %v1703_v58 = vpop.eup %1702  ;;  %1722 = vrcp.f32 %v1380_v13  ;;  %v1454_v20 = vrot.slane %v1701_v55, %v2153_v7 }
 0x33c   : > { %v1705_v3 = vpop.eup %1704  ;;  %v1450_v4 = vsel %vm1440_vm5, %v1449_v33, %v1445_v12  ;;  %v1458_v5 = vrot.slane %v1703_v58, %v2156_v51 }
 0x33d   : > { %v1707_v2 = vpop.eup %1706  ;;  %v1463_v57 = vrot.slane %v1705_v3, %v2153_v7  ;;  %v1506_v15 = vsel %vm1505_vm6, %v1450_v4, %v1441_v56 }
 0x33e   : > { %v1709_v9 = vpop.eup %1708  ;;  %v1459_v16 = vsel %vm1440_vm5, %v1458_v5, %v1454_v20  ;;  %v1467_v60 = vrot.slane %v1707_v2, %v2156_v51 }
 0x33f   : > { %v1711_v18 = vpop.eup %1710  ;;  %v1472_v19 = vrot.slane %v1709_v9, %v2153_v7  ;;  %v1508_v21 = vsel %vm1507_vm7, %v1459_v16, %v1506_v15 }
 0x340   : > { %v1713_v23 = vpop.eup %1712  ;;  %v1468_v10 = vsel %vm1440_vm5, %v1467_v60, %v1463_v57  ;;  %v1476_v22 = vrot.slane %v1711_v18, %v2156_v51 }
 0x341   : > { %v1715_v28 = vpop.eup %1714  ;;  %v1481_v30 = vrot.slane %v1713_v23, %v2153_v7  ;;  %v1510_v24 = vsel %vm1509_vm8, %v1468_v10, %v1508_v21 }
 0x342   : > { %v1717_v8 = vpop.eup %1716  ;;  %v1477_v35 = vsel %vm1440_vm5, %v1476_v22, %v1472_v19  ;;  %v1485_v36 = vrot.slane %v1715_v28, %v2156_v51 }
 0x343   : > { %v1719_v47 = vpop.eup %1718  ;;  %v1490_v52 = vrot.slane %v1717_v8, %v2153_v7  ;;  %v1512_v37 = vsel %vm1511_vm9, %v1477_v35, %v1510_v24 }
 0x344   : > { %v1721_v39 = vpop.eup %1720  ;;  %v1486_v27 = vsel %vm1440_vm5, %v1485_v36, %v1481_v30  ;;  %v1494_v40 = vrot.slane %v1719_v47, %v2156_v51 }
 0x345   : > { %v1723_v41 = vpop.eup %1722  ;;  %v1499_v42 = vrot.slane %v1721_v39, %v2153_v7  ;;  %v1514_v11 = vsel %vm1513_vm10, %v1486_v27, %v1512_v37 }
 0x346   : > { %v1495_v43 = vsel %vm1440_vm5, %v1494_v40, %v1490_v52  ;;  %v1503_v44 = vrot.slane %v1723_v41, %v2156_v51 }
 0x347   : > { %v1516_v45 = vsel %vm1515_vm11, %v1495_v43, %v1514_v11 }
 0x348   : > { %v1504_v0 = vsel %vm1440_vm5, %v1503_v44, %v1499_v42 }
 0x349   : > { %v1518_v46 = vsel %vm1517_vm12, %v1504_v0, %v1516_v45 }
 0x34a   : > { %1520 = vst.msk [vmem:[%s283_s25] sm:$0xff] %vm363_vm0, %v1518_v46 }
 0x34b PF: > { %s19_s26 = sadd.s32 1, %s1730_s26  }
 0x34c   : > { %p16_p5 = scmp.ge.s32.totalorder %s19_s26, 4  }
 0x34e   :  { %18 = sbr.rel (!%p16_p5) target bundleno = 3 (0x3), region = 78 }

// kernel: conv_baseline_forward.2
= control target key start
LH: loop header
LB: loop body
LE: loop exit
PB: predicated region body
PF: predicated region fallthrough
CT: control target
= control target key end

     0   :  { %s1628_s24 = smov 0   ;;  %s2161_s0 = inlined_call_operand.vmem [shape: f32[16,16,64], index: 0, kind: input, shape index: {}]   ;;  %s2162_s1 = inlined_call_operand.vmem [shape: f32[1,64], index: 1, kind: input, shape index: {}]   ;;  %s2163_s2 = inlined_call_operand.vmem [shape: f32[1,64], index: 2, kind: input, shape index: {}]   ;;  %s2164_s3 = inlined_call_operand.vmem [shape: bf16[64,48], index: 3, kind: input, shape index: {}]   ;;  %s2165_s4 = inlined_call_operand.vmem [shape: f32[1,16], index: 4, kind: input, shape index: {}]   ;;  %s2166_s5 = inlined_call_operand.vmem [shape: f32[16,16,16], index: 5, kind: output, shape index: {0}]   ;;  %s2167_s6 = inlined_call_operand.vmem [shape: f32[2,1,16], index: 6, kind: output, shape index: {1}]   ;;  %s2168_s7 = inlined_call_operand.vmem [shape: f32[2,1,16], index: 7, kind: output, shape index: {2}]  }
   0x1 LB: > { %s1634_s25 = sadd.s32 4294967295, %s1583_s24   ;;  %p1492_p0 = scmp.ge.s32.totalorder %s1583_s24, 1  ;;  %s1583_s24 = sphi %s1628_s24, %s18_s24  }
   0x2   : > { %p244_p1 = scmp.lt.s32.totalorder %s1583_s24, 3 }
   0x4   : > { %p245_p2 = pnand %p1492_p0, %p244_p1 }
   0x5   : > { %v1573_v0 = vld [vmem:[%s2164_s3] sm:$0xff] (!%p245_p2)   ;;  %s1493_s28 = sshll.u32 (!%p245_p2), %s1634_s25, 3  ;;  %v1574_v1 = vld [vmem:[%s2164_s3 + $0x8] sm:$0xff] (!%p245_p2)   ;;  %v1575_v2 = vld [vmem:[%s2164_s3 + $0x10] sm:$0xff] (!%p245_p2)   ;;  %vm407_vm0 = vcmask (!%p245_p2), 523264   ;;  %v529_v62 = vlaneseq (!%p245_p2)  ;;  %s1585_s20 = smov (!%p245_p2), 96  }
   0x6   : > { %248 = sbr.rel (%p245_p2) target bundleno = 676 (0x2a4), region = 40  ;;  %p285_p3 = scmp.lt.s32.totalorder (!%p245_p2), %s1493_s28, 15  ;;  %1530 = vmatprep.subr.bf16.mxu0 (!%p245_p2), %v1573_v0  ;;  %1554 = vmatprep.subr.bf16.mxu1 (!%p245_p2), %v1573_v0  ;;  %v1654_v3 = vld [vmem:[%s2162_s1] ss:$0 sm:$0xff] (!%p245_p2)  ;;  %v1576_v4 = vld [vmem:[%s2164_s3 + $0x18] sm:$0xff] (!%p245_p2)  }
   0x7   : > { %1531 = vmatpush3.bf16.msra.mxu0 (!%p245_p2), %v1573_v0  ;;  %1558 = vmatpush3.bf16.msra.mxu1 (!%p245_p2), %v1573_v0  ;;  %v1669_v5 = vld [vmem:[%s2163_s2] ss:$0 sm:$0xff] (!%p245_p2)  ;;  %s1586_s23 = smov (!%p245_p2), 16   ;;  %s1587_s26 = smov (!%p245_p2), 112  }
   0x8   : > { %1532 = vmatprep.subr.bf16.mxu0 (!%p245_p2), %v1574_v1  ;;  %1555 = vmatprep.subr.bf16.mxu1 (!%p245_p2), %v1574_v1  ;;  %p298_p4 = scmp.lt.s32.totalorder (!%p245_p2), %s1634_s25, 1 }
   0xb   : > { %1533 = vmatpush3.bf16.msra.mxu0 (!%p245_p2), %v1574_v1  ;;  %1559 = vmatpush3.bf16.msra.mxu1 (!%p245_p2), %v1574_v1  ;;  %v1731_v1 = vshrl.u32 (!%p245_p2), %v529_v62, 7 }
   0xc   : > { %1534 = vmatprep.subr.bf16.mxu0 (!%p245_p2), %v1575_v2  ;;  %1556 = vmatprep.subr.bf16.mxu1 (!%p245_p2), %v1575_v2 }
   0xd   : > { %s2170_s28 = smov (!%p285_p3, %s1493_s28), 15  ;;  %vm795_vm1 = vcmp.lt.s32.totalorder %v1731_v1, 1  ;;  %vm1036_vm7 = vcmp.lt.s32.totalorder %v1731_v1, 7  ;;  %s2172_s25 = smov (!%p298_p4, %s1634_s25), 1 }
   0xe   : > { %s1516_s10 = sshll.u32 %s2170_s28, 4  ;;  %s300_s9 = scalar_lea.vmem %s2167_s6, %s2172_s25 }
   0xf   : > { %s1664_s17 = scalar_lea.vmem %s2161_s0, %s1516_s10  ;;  %1535 = vmatpush3.bf16.msra.mxu0 %v1575_v2  ;;  %1560 = vmatpush3.bf16.msra.mxu1 %v1575_v2  ;;  %s2116_s30 = scalar_lea.vmem %s2166_s5, %s1516_s10 }
  0x10   : > { %v305_v6 = vld [vmem:[%s1664_s17] sm:$0xff]  ;;  %v306_v7 = vld [vmem:[%s1664_s17 + $0x8] sm:$0xff]  ;;  %v307_v13 = vld [vmem:[%s1664_s17 + $0x10] sm:$0xff]  ;;  %1536 = vmatprep.subr.bf16.mxu0 %v1576_v4  ;;  %1557 = vmatprep.subr.bf16.mxu1 %v1576_v4  ;;  %s303_s12 = scalar_lea.vmem %s2168_s7, %s2172_s25 }
  0x11   : > { %v313_v8 = vld [vmem:[%s1664_s17 + $0x40] sm:$0xff]  ;;  %v328_v9 = vmul.f32 %v1654_v3, %v305_v6  ;;  %v329_v10 = vmul.f32 %v1654_v3, %v306_v7  ;;  %v314_v11 = vld [vmem:[%s1664_s17 + $0x48] sm:$0xff]  ;;  %v308_v14 = vld [vmem:[%s1664_s17 + $0x18] sm:$0xff]  ;;  %v330_v16 = vmul.f32 %v1654_v3, %v307_v13 }
  0x12   : > { %v336_v12 = vmul.f32 %v1654_v3, %v313_v8  ;;  %v337_v15 = vmul.f32 %v1654_v3, %v314_v11  ;;  %v331_v17 = vmul.f32 %v1654_v3, %v308_v14  ;;  %v315_v18 = vld [vmem:[%s1664_s17 + $0x50] sm:$0xff]  ;;  %v316_v19 = vld [vmem:[%s1664_s17 + $0x58] sm:$0xff]  ;;  %v309_v24 = vld [vmem:[%s1664_s17 + $0x20] sm:$0xff] }
  0x13   : > { %v351_v20 = vadd.f32 %v1669_v5, %v328_v9  ;;  %v352_v21 = vadd.f32 %v1669_v5, %v329_v10  ;;  %v338_v23 = vmul.f32 %v1654_v3, %v315_v18  ;;  %v310_v25 = vld [vmem:[%s1664_s17 + $0x28] sm:$0xff]  ;;  %v353_v27 = vadd.f32 %v1669_v5, %v330_v16  ;;  %v317_v29 = vld [vmem:[%s1664_s17 + $0x60] sm:$0xff]  ;;  %v311_v31 = vld [vmem:[%s1664_s17 + $0x30] sm:$0xff]  ;;  %1537 = vmatpush3.bf16.msra.mxu0 %v1576_v4 }
  0x14   : > { %v359_v22 = vadd.f32 %v1669_v5, %v336_v12  ;;  %v360_v26 = vadd.f32 %v1669_v5, %v337_v15  ;;  %v354_v28 = vadd.f32 %v1669_v5, %v331_v17  ;;  %v318_v30 = vld [vmem:[%s1664_s17 + $0x68] sm:$0xff]  ;;  %v339_v33 = vmul.f32 %v1654_v3, %v316_v19  ;;  %v312_v35 = vld [vmem:[%s1664_s17 + $0x38] sm:$0xff]  ;;  %v319_v44 = vld [vmem:[%s1664_s17 + $0x70] sm:$0xff]  ;;  %1561 = vmatpush3.bf16.msra.mxu1 %v1576_v4 }
  0x15   : > { %v367_v32 = vpack.c.bf16 %v352_v21, %v351_v20  ;;  %v361_v34 = vadd.f32 %v1669_v5, %v338_v23  ;;  %v332_v38 = vmul.f32 %v1654_v3, %v309_v24  ;;  %v333_v39 = vmul.f32 %v1654_v3, %v310_v25  ;;  %v320_v45 = vld [vmem:[%s1664_s17 + $0x78] sm:$0xff] }
  0x16   : > { %v371_v36 = vpack.c.bf16 %v360_v26, %v359_v22  ;;  %v368_v37 = vpack.c.bf16 %v354_v28, %v353_v27  ;;  %v362_v40 = vadd.f32 %v1669_v5, %v339_v33  ;;  %v340_v41 = vmul.f32 %v1654_v3, %v317_v29 }
  0x17   : > { %1538 = vmatprep.mubr.msk.bf16.mxu0 %vm407_vm0, %v367_v32  ;;  %v341_v42 = vmul.f32 %v1654_v3, %v318_v30  ;;  %v334_v43 = vmul.f32 %v1654_v3, %v311_v31  ;;  %v355_v46 = vadd.f32 %v1669_v5, %v332_v38  ;;  %v356_v47 = vadd.f32 %v1669_v5, %v333_v39 }
  0x18   : > { %v335_v48 = vmul.f32 %v1654_v3, %v312_v35  ;;  %1546 = vmatprep.mubr.msk.bf16.mxu1 %vm407_vm0, %v371_v36  ;;  %v372_v49 = vpack.c.bf16 %v362_v40, %v361_v34  ;;  %v363_v50 = vadd.f32 %v1669_v5, %v340_v41  ;;  %v342_v53 = vmul.f32 %v1654_v3, %v319_v44 }
  0x19   : > { %v364_v51 = vadd.f32 %v1669_v5, %v341_v42  ;;  %v369_v52 = vpack.c.bf16 %v356_v47, %v355_v46  ;;  %v343_v54 = vmul.f32 %v1654_v3, %v320_v45  ;;  %1539 = vmatmul.mubr.msk.bf16.vlgmr.msra.gmra.mrb[0].mxu0 %vm407_vm0, %v368_v37  ;;  %v357_v56 = vadd.f32 %v1669_v5, %v334_v43 }
  0x1a   : > { %1547 = vmatmul.mubr.msk.bf16.vlgmr.msra.gmra.mrb[0].mxu1 %vm407_vm0, %v372_v49  ;;  %v358_v57 = vadd.f32 %v1669_v5, %v335_v48  ;;  %v365_v58 = vadd.f32 %v1669_v5, %v342_v53  ;;  %v532_v48 = vadd.s32 16, %v1731_v1  ;;  %v534_v53 = vadd.s32 32, %v1731_v1 }
  0x1b   : > { %v373_v55 = vpack.c.bf16 %v364_v51, %v363_v50  ;;  %1542 = vmatprep.mubr.msk.bf16.mxu0 %vm407_vm0, %v369_v52  ;;  %v366_v59 = vadd.f32 %v1669_v5, %v343_v54  ;;  %v1513_v50 = vld [vmem:[%s2165_s4] ss:$0 sm:$0xff]  ;;  %v550_v51 = vand.u32 15, %v1731_v1 }
  0x1c   : > { %v370_v60 = vpack.c.bf16 %v358_v57, %v357_v56  ;;  %v564_v49 = vand.u32 15, %v532_v48  ;;  %v538_v57 = vadd.s32 64, %v1731_v1 }
  0x1d   : > { %1550 = vmatprep.mubr.msk.bf16.mxu1 %vm407_vm0, %v373_v55  ;;  %v374_v61 = vpack.c.bf16 %v366_v59, %v365_v58  ;;  %vm763_vm3 = vcmp.eq.s32.totalorder %v550_v51, 0  ;;  %v578_v55 = vand.u32 15, %v534_v53  ;;  %v536_v59 = vadd.s32 48, %v1731_v1 }
  0x1e   : > { %vm765_vm2 = vcmp.eq.s32.totalorder %v564_v49, 0  ;;  %v606_v58 = vand.u32 15, %v538_v57  ;;  %v533_v51 = vadd.s32 24, %v1731_v1 }
  0x1f   : > { %vm767_vm4 = vcmp.eq.s32.totalorder %v578_v55, 0  ;;  %v545_v55 = vadd.s32 120, %v1731_v1 }
  0x20   : > { %vm771_vm5 = vcmp.eq.s32.totalorder %v606_v58, 0  ;;  %v571_v58 = vand.u32 15, %v533_v51 }
  0x21   : > { %1543 = vmatmul.mubr.msk.bf16.gmra.mrb[4].mxu0 %vm407_vm0, %v370_v60  ;;  %v592_v60 = vand.u32 15, %v536_v59 }
  0x22   : > { %1551 = vmatmul.mubr.msk.bf16.gmra.mrb[4].mxu1 %vm407_vm0, %v374_v61  ;;  %vm943_vm13 = vcmp.eq.s32.totalorder %v571_v58, 15 }
  0x23   : > { %vm769_vm6 = vcmp.eq.s32.totalorder %v592_v60, 0 }
  0xec   : > { %v1727_v63 = vpop.f32.mrb[0].mxu0 }
  0xed   : > { %v1729_v0 = vpop.f32.mrb[0].mxu1  ;;  %976 = vrot.lane.b32.xlu0 %v1727_v63, %s1585_s20  ;;  %v1735_v2 = vpop.f32.mrb[1].mxu0  ;;  %v781_v7 = vrot.slane %v1727_v63, 7 }
  0xee   : > { %v789_v3 = vrot.slane %v1729_v0, 7  ;;  %v1738_v4 = vpop.f32.mrb[1].mxu1  ;;  %972 = vrot.lane.b32.xlu1 %v1735_v2, %s1585_s20  ;;  %v1742_v5 = vpop.f32.mrb[2].mxu0  ;;  %v779_v12 = vrot.slane %v1735_v2, 7 }
  0xef   : > { %v1744_v6 = vpop.f32.mrb[2].mxu1  ;;  %v782_v8 = vrot.slane %v1742_v5, 7  ;;  %v1749_v9 = vpop.f32.mrb[3].mxu0  ;;  %v787_v14 = vrot.slane %v1738_v4, 7 }
  0xf0   : > { %v790_v10 = vrot.slane %v1744_v6, 7  ;;  %v1752_v11 = vpop.f32.mrb[3].mxu1  ;;  %v780_v13 = vrot.slane %v1749_v9, 7 }
  0xf1   : > { %v788_v15 = vrot.slane %v1752_v11, 7  ;;  %974 = vrot.lane.b32.xlu0 %v1749_v9, %s1585_s20  ;;  %v808_v16 = vsel %vm795_vm1, %v781_v7, %v782_v8 }
  0xf2   : > { %v1764_v17 = vsel %vm795_vm1, %v789_v3, %v790_v10  ;;  %978 = vrot.lane.b32.xlu1 %v1742_v5, %s1585_s20  ;;  %v809_v18 = vsel %vm795_vm1, %v780_v13, %v781_v7  ;;  %v810_v19 = vsel %vm795_vm1, %v779_v12, %v780_v13  ;;  %v540_v7 = vadd.s32 80, %v1731_v1 }
  0xf3   : > { %v802_v20 = vsel %vm795_vm1, %v787_v14, %v788_v15  ;;  %v1776_v21 = vsel %vm795_vm1, %v788_v15, %v789_v3  ;;  %v846_v52 = vsel %vm765_vm2, 0.0, %v809_v18 }
  0xf4   : > { %v1778_v22 = vpop.f32.mrb[4].mxu0 }
  0xf5   : > { %v1780_v23 = vpop.f32.mrb[4].mxu1  ;;  %v1782_v24 = vpop.f32.mrb[5].mxu0  ;;  %v785_v30 = vrot.slane %v1778_v22, 7 }
  0xf6   : > { %v1784_v25 = vpop.f32.mrb[5].mxu1  ;;  %v783_v26 = vrot.slane %v1782_v24, 7  ;;  %980 = vrot.lane.b32.xlu0 %v1782_v24, %s1585_s20  ;;  %v1792_v29 = vpop.f32.mrb[6].mxu0  ;;  %v793_v31 = vrot.slane %v1780_v23, 7 }
  0xf7   : > { %v791_v27 = vrot.slane %v1784_v25, 7  ;;  %v1788_v28 = vpop.f32.mrb[6].mxu1  ;;  %v786_v33 = vrot.slane %v1792_v29, 7  ;;  %v1798_v34 = vpop.f32.mrb[7].mxu0 }
  0xf8   : > { %v794_v32 = vrot.slane %v1788_v28, 7  ;;  %v1800_v35 = vpop.f32.mrb[7].mxu1  ;;  %v784_v36 = vrot.slane %v1798_v34, 7  ;;  %982 = vrot.lane.b32.xlu1 %v1798_v34, %s1585_s20  ;;  %v807_v38 = vsel %vm795_vm1, %v782_v8, %v783_v26 }
  0xf9   : > { %v792_v37 = vrot.slane %v1800_v35, 7  ;;  %v1810_v39 = vsel %vm795_vm1, %v790_v10, %v791_v27  ;;  %v804_v41 = vsel %vm795_vm1, %v785_v30, %v786_v33  ;;  %v803_v42 = vsel %vm795_vm1, %v786_v33, %v787_v14 }
  0xfa   : > { %v811_v40 = vsel %vm795_vm1, %v794_v32, %v779_v12  ;;  %984 = vrot.lane.b32.xlu0 %v1778_v22, %s1585_s20  ;;  %v806_v43 = vsel %vm795_vm1, %v783_v26, %v784_v36  ;;  %v805_v44 = vsel %vm795_vm1, %v784_v36, %v785_v30  ;;  %v1836_v47 = vsel %vm795_vm1, %v793_v31, %v794_v32 }
  0xfb   : > { %v1826_v45 = vsel %vm795_vm1, %v791_v27, %v792_v37  ;;  %v1830_v46 = vsel %vm795_vm1, %v792_v37, %v793_v31  ;;  %v844_v54 = vsel %vm763_vm3, 0.0, %v811_v40  ;;  %v848_v56 = vsel %vm767_vm4, 0.0, %v807_v38 }
  0xfc   : > { %986 = vrot.lane.b32.xlu1 %v1792_v29, %s1585_s20  ;;  %v852_v61 = vsel %vm771_vm5, 0.0, %v803_v42  ;;  %v850_v62 = vsel %vm769_vm6, 0.0, %v805_v44  ;;  %v620_v12 = vand.u32 15, %v540_v7  ;;  %v542_v26 = vadd.s32 96, %v1731_v1 }
  0xfd   : > { %v531_v37 = vadd.s32 8, %v1731_v1  ;;  %v544_v38 = vadd.s32 112, %v1731_v1  ;;  %vm1278_vm3 = vcmask 261248   ;;  %vm1261_vm4 = vcmask 130048  }
  0xfe   : > { %988 = vrot.lane.b32.xlu0 %v1738_v4, %s1585_s20  ;;  %vm773_vm8 = vcmp.eq.s32.totalorder %v620_v12, 0  ;;  %v634_v32 = vand.u32 15, %v542_v26  ;;  %vm1320_vm5 = vcmask 122880  }
  0xff   : > { %v854_v31 = vsel %vm773_vm8, 0.0, %v1776_v21  ;;  %v557_v21 = vand.u32 15, %v531_v37  ;;  %v648_v49 = vand.u32 15, %v544_v38  ;;  %v541_v37 = vadd.s32 88, %v1731_v1 }
 0x100   : > { %990 = vrot.lane.b32.xlu1 %v1752_v11, %s1585_s20  ;;  %vm775_vm9 = vcmp.eq.s32.totalorder %v634_v32, 0 }
 0x101   : > { %v856_v42 = vsel %vm775_vm9, 0.0, %v1810_v39  ;;  %vm941_vm10 = vcmp.eq.s32.totalorder %v557_v21, 15  ;;  %vm777_vm11 = vcmp.eq.s32.totalorder %v648_v49, 0 }
 0x102   : > { %992 = vrot.lane.b32.xlu0 %v1729_v0, %s1585_s20 }
 0x104   : > { %994 = vrot.lane.b32.xlu1 %v1744_v6, %s1585_s20 }
 0x106   : > { %996 = vrot.lane.b32.xlu0 %v1784_v25, %s1585_s20 }
 0x108   : > { %998 = vrot.lane.b32.xlu1 %v1800_v35, %s1585_s20 }
 0x10a   : > { %1000 = vrot.lane.b32.xlu0 %v1780_v23, %s1585_s20 }
 0x10c   : > { %1002 = vrot.lane.b32.xlu1 %v1788_v28, %s1585_s20 }
 0x10e   : > { %744 = vrot.lane.b32.xlu0 %v1513_v50, %s1586_s23 }
 0x110   : > { %880 = vrot.lane.b32.xlu1 %v846_v52, %s1586_s23 }
 0x112   : > { %878 = vrot.lane.b32.xlu0 %v810_v19, %s1586_s23 }
 0x114   : > { %876 = vrot.lane.b32.xlu1 %v844_v54, %s1586_s23 }
 0x116   : > { %882 = vrot.lane.b32.xlu0 %v808_v16, %s1586_s23 }
 0x11a   : > { %894 = vrot.lane.b32.xlu0 %v802_v20, %s1586_s23 }
 0x11e   : > { %884 = vrot.lane.b32.xlu0 %v848_v56, %s1586_s23 }
 0x122   : > { %890 = vrot.lane.b32.xlu0 %v804_v41, %s1586_s23 }
 0x126   : > { %886 = vrot.lane.b32.xlu0 %v806_v43, %s1586_s23  ;;  %v539_v43 = vadd.s32 72, %v1731_v1 }
 0x128   : > { %v613_v54 = vand.u32 15, %v539_v43 }
 0x12a   : > { %892 = vrot.lane.b32.xlu0 %v852_v61, %s1586_s23  ;;  %v858_v61 = vsel %vm777_vm11, 0.0, %v1830_v46  ;;  %vm949_vm12 = vcmp.eq.s32.totalorder %v613_v54, 15 }
 0x12e   : > { %888 = vrot.lane.b32.xlu0 %v850_v62, %s1586_s23 }
 0x15f   : > { %v977_v3 = vpop.permute.xlu0 %976 }
 0x160   : > { %v1874_v8 = vpop.permute.xlu1 %972  ;;  %v1022_v16 = vrot.slane %v977_v3, 1 }
 0x161   : > { %v1020_v13 = vrot.slane %v1874_v8, 1 }
 0x163   : > { %v975_v10 = vpop.permute.xlu0 %974 }
 0x164   : > { %v1021_v14 = vrot.slane %v975_v10, 1  ;;  %v979_v15 = vpop.permute.xlu1 %978 }
 0x165   : > { %v1023_v18 = vrot.slane %v979_v15, 1 }
 0x166   : > { %v1051_v19 = vsel %vm1036_vm7, %v1020_v13, %v1021_v14  ;;  %v1050_v53 = vsel %vm1036_vm7, %v1021_v14, %v1022_v16 }
 0x167   : > { %1117 = vrot.lane.b32.xlu0 %v1051_v19, %s1586_s23  ;;  %v1049_v20 = vsel %vm1036_vm7, %v1022_v16, %v1023_v18  ;;  %v1086_v57 = vsel %vm941_vm10, 0.0, %v1050_v53 }
 0x168   : > { %v1886_v27 = vpop.permute.xlu0 %980  ;;  %1121 = vrot.lane.b32.xlu1 %v1049_v20, %s1586_s23 }
 0x169   : > { %v1024_v59 = vrot.slane %v1886_v27, 1 }
 0x16a   : > { %v1889_v30 = vpop.permute.xlu1 %982 }
 0x16b   : > { %896 = vrot.lane.b32.xlu0 %v854_v31, %s1586_s23  ;;  %v1048_v12 = vsel %vm1036_vm7, %v1023_v18, %v1024_v59  ;;  %v537_v18 = vadd.s32 56, %v1731_v1  ;;  %v535_v31 = vadd.s32 40, %v1731_v1 }
 0x16c   : > { %v1893_v33 = vpop.permute.xlu0 %984  ;;  %v1088_v15 = vsel %vm943_vm13, 0.0, %v1048_v12 }
 0x16d   : > { %v1026_v26 = vrot.slane %v1893_v33, 1  ;;  %v585_v33 = vand.u32 15, %v535_v31 }
 0x16e   : > { %v1895_v36 = vpop.permute.xlu1 %986 }
 0x16f   : > { %898 = vrot.lane.b32.xlu0 %v1764_v17, %s1586_s23  ;;  %v1027_v46 = vrot.slane %v1895_v36, 1  ;;  %vm945_vm0 = vcmp.eq.s32.totalorder %v585_v33, 15 }
 0x170   : > { %v989_v40 = vpop.permute.xlu0 %988 }
 0x171   : > { %v1028_v44 = vrot.slane %v989_v40, 1  ;;  %v1045_v27 = vsel %vm1036_vm7, %v1026_v26, %v1027_v46 }
 0x172   : > { %v991_v41 = vpop.permute.xlu1 %990 }
 0x173   : > { %v1029_v48 = vrot.slane %v991_v41, 1  ;;  %900 = vrot.lane.b32.xlu0 %v856_v42, %s1586_s23  ;;  %v627_v42 = vand.u32 15, %v541_v37 }
 0x174   : > { %v1904_v50 = vpop.permute.xlu0 %992 }
 0x175   : > { %v1043_v17 = vsel %vm1036_vm7, %v1028_v44, %v1029_v48  ;;  %v1030_v52 = vrot.slane %v1904_v50, 1  ;;  %vm951_vm1 = vcmp.eq.s32.totalorder %v627_v42, 15 }
 0x176   : > { %1133 = vrot.lane.b32.xlu1 %v1043_v17, %s1586_s23  ;;  %v995_v39 = vpop.permute.xlu1 %994 }
 0x177   : > { %902 = vrot.lane.b32.xlu0 %v1826_v45, %s1586_s23  ;;  %v1042_v62 = vsel %vm1036_vm7, %v1029_v48, %v1030_v52  ;;  %v655_v45 = vand.u32 15, %v545_v55  ;;  %v1031_v38 = vrot.slane %v995_v39, 1 }
 0x178   : > { %v997_v56 = vpop.permute.xlu0 %996  ;;  %v1094_v7 = vsel %vm949_vm12, 0.0, %v1042_v62 }
 0x179   : > { %vm955_vm14 = vcmp.eq.s32.totalorder %v655_v45, 15  ;;  %v1032_v41 = vrot.slane %v997_v56, 1  ;;  %v1041_v21 = vsel %vm1036_vm7, %v1030_v52, %v1031_v38 }
 0x17a   : > { %1119 = vrot.lane.b32.xlu1 %v1086_v57, %s1586_s23  ;;  %v999_v60 = vpop.permute.xlu1 %998 }
 0x17b   : > { %904 = vrot.lane.b32.xlu0 %v858_v61, %s1586_s23  ;;  %v1040_v43 = vsel %vm1036_vm7, %v1031_v38, %v1032_v41  ;;  %v1033_v48 = vrot.slane %v999_v60, 1 }
 0x17c   : > { %v1001_v3 = vpop.permute.xlu0 %1000  ;;  %v1096_v49 = vsel %vm951_vm1, 0.0, %v1040_v43 }
 0x17d   : > { %v1034_v50 = vrot.slane %v1001_v3, 1  ;;  %v1039_v51 = vsel %vm1036_vm7, %v1032_v41, %v1033_v48 }
 0x17e   : > { %1135 = vrot.lane.b32.xlu1 %v1094_v7, %s1586_s23  ;;  %v1003_v10 = vpop.permute.xlu1 %1002 }
 0x17f   : > { %v1035_v14 = vrot.slane %v1003_v10, 1  ;;  %906 = vrot.lane.b32.xlu0 %v1836_v47, %s1586_s23  ;;  %v1025_v47 = vrot.slane %v1889_v30, 1  ;;  %v1044_v30 = vsel %vm1036_vm7, %v1027_v46, %v1028_v44  ;;  %v543_v44 = vadd.s32 104, %v1731_v1 }
 0x180   : > { %v1932_v19 = vpop.permute.xlu0 %744  ;;  %v1038_v52 = vsel %vm1036_vm7, %v1033_v48, %v1034_v50 }
 0x181   : > { %v1052_v16 = vsel %vm1036_vm7, %v1035_v14, %v1020_v13  ;;  %v1943_v8 = vadd.f32 %v1780_v23, %v1932_v19  ;;  %v599_v13 = vand.u32 15, %v537_v18  ;;  %v1047_v32 = vsel %vm1036_vm7, %v1024_v59, %v1025_v47 }
 0x182   : > { %1123 = vrot.lane.b32.xlu1 %v1088_v15, %s1586_s23  ;;  %v1100_v20 = vsel %vm955_vm14, 0.0, %v1052_v16  ;;  %v1046_v23 = vsel %vm1036_vm7, %v1025_v47, %v1026_v26  ;;  %v641_v17 = vand.u32 15, %v543_v44  ;;  %v1037_v53 = vsel %vm1036_vm7, %v1034_v50, %v1035_v14  ;;  %v881_v59 = vpop.permute.xlu1 %880 }
 0x183   : > { %1147 = vrot.lane.b32.xlu0 %v1100_v20, %s1586_s23  ;;  %vm947_vm15 = vcmp.eq.s32.totalorder %v599_v13, 15  ;;  %v1090_v40 = vsel %vm945_vm0, 0.0, %v1046_v23  ;;  %v749_v61 = vadd.f32 %v1727_v63, %v1932_v19  ;;  %v747_v14 = vadd.f32 %v1932_v19, %v1735_v2 }
 0x184   : > { %v1092_v36 = vsel %vm947_vm15, 0.0, %v1044_v30  ;;  %vm953_vm2 = vcmp.eq.s32.totalorder %v641_v17, 15  ;;  %v879_v54 = vpop.permute.xlu0 %878  ;;  %v748_v63 = vadd.f32 %v1932_v19, %v1749_v9  ;;  %v756_v13 = vadd.f32 %v1932_v19, %v1752_v11 }
 0x185   : > { %v1098_v39 = vsel %vm953_vm2, 0.0, %v1038_v52  ;;  %v926_v45 = vadd.f32 %v881_v59, %v749_v61  ;;  %v750_v33 = vadd.f32 %v1742_v5, %v1932_v19 }
 0x186   : > { %1129 = vrot.lane.b32.xlu1 %v1045_v27, %s1586_s23  ;;  %v877_v62 = vpop.permute.xlu1 %876  ;;  %v925_v18 = vadd.f32 %v879_v54, %v748_v63  ;;  %v752_v63 = vadd.f32 %v1932_v19, %v1798_v34 }
 0x187   : > { %v924_v15 = vadd.f32 %v877_v62, %v747_v14 }
 0x188   : > { %v883_v55 = vpop.permute.xlu0 %882 }
 0x189   : > { %v927_v41 = vadd.f32 %v883_v55, %v750_v33  ;;  %v751_v55 = vadd.f32 %v1932_v19, %v1782_v24  ;;  %v754_v24 = vadd.f32 %v1792_v29, %v1932_v19 }
 0x18a   : > { %1125 = vrot.lane.b32.xlu1 %v1047_v32, %s1586_s23 }
 0x18c   : > { %v895_v56 = vpop.permute.xlu0 %894 }
 0x18d   : > { %v933_v2 = vadd.f32 %v895_v56, %v756_v13 }
 0x18e   : > { %1131 = vrot.lane.b32.xlu1 %v1092_v36, %s1586_s23 }
 0x190   : > { %v885_v57 = vpop.permute.xlu0 %884 }
 0x191   : > { %v928_v62 = vadd.f32 %v885_v57, %v751_v55  ;;  %v755_v57 = vadd.f32 %v1932_v19, %v1738_v4 }
 0x192   : > { %1127 = vrot.lane.b32.xlu1 %v1090_v40, %s1586_s23 }
 0x194   : > { %v1973_v58 = vpop.permute.xlu0 %890 }
 0x196   : > { %1137 = vrot.lane.b32.xlu1 %v1041_v21, %s1586_s23 }
 0x198   : > { %v1975_v60 = vpop.permute.xlu0 %886 }
 0x19a   : > { %1139 = vrot.lane.b32.xlu1 %v1096_v49, %s1586_s23 }
 0x19c   : > { %v1979_v3 = vpop.permute.xlu0 %892 }
 0x19d   : > { %v932_v29 = vadd.f32 %v1979_v3, %v755_v57 }
 0x19e   : > { %1141 = vrot.lane.b32.xlu1 %v1039_v51, %s1586_s23 }
 0x1a0   : > { %v889_v12 = vpop.permute.xlu0 %888 }
 0x1a2   : > { %1143 = vrot.lane.b32.xlu1 %v1098_v39, %s1586_s23 }
 0x1a6   : > { %1145 = vrot.lane.b32.xlu1 %v1037_v53, %s1586_s23 }
 0x1d9   : > { %v1118_v46 = vpop.permute.xlu0 %1117 }
 0x1da   : > { %v1122_v1 = vpop.permute.xlu1 %1121  ;;  %v1165_v16 = vadd.f32 %v1118_v46, %v924_v15 }
 0x1db   : > { %v1167_v7 = vadd.f32 %v1122_v1, %v926_v45 }
 0x1dc   : > { %v1988_v26 = vmax.f32 %v1165_v16, 0.0 }
 0x1dd   : > { %v1183_v10 = vmax.f32 %v1167_v7, 0.0  ;;  %v1990_v47 = vpop.permute.xlu0 %896 }
 0x1de   : > { %v1322_v32 = vmul.f32 %v1988_v26, %v1988_v26  ;;  %v1279_v9 = vsel %vm1278_vm3, %v1988_v26, 0.0 }
 0x1df   : > { %1217 = vrot.lane.b32.xlu1 %v1183_v10, %s1587_s26  ;;  %v1324_v23 = vmul.f32 %v1183_v10, %v1183_v10  ;;  %v1282_v43 = vsel %vm1278_vm3, %v1183_v10, 0.0  ;;  %v753_v10 = vadd.f32 %v1778_v22, %v1932_v19 }
 0x1e0   : > { %v1338_v21 = vsel %vm1278_vm3, %v1322_v32, 0.0 }
 0x1e1   : > { %v2000_v37 = vpop.permute.xlu0 %898  ;;  %v1341_v17 = vsel %vm1278_vm3, %v1324_v23, 0.0  ;;  %v930_v15 = vadd.f32 %v889_v12, %v753_v10 }
 0x1e5   : > { %v2012_v39 = vpop.permute.xlu0 %900 }
 0x1e8   : > { %v1984_v20 = vpop.permute.xlu1 %1133 }
 0x1e9   : > { %v2021_v14 = vpop.permute.xlu0 %902 }
 0x1ec   : > { %v1120_v27 = vpop.permute.xlu1 %1119 }
 0x1ed   : > { %v1166_v31 = vadd.f32 %v1120_v27, %v925_v18  ;;  %v931_v27 = vadd.f32 %v1973_v58, %v754_v24  ;;  %v2038_v32 = vpop.permute.xlu0 %904  ;;  %v760_v24 = vadd.f32 %v1932_v19, %v1800_v35 }
 0x1ef   : > { %v1182_v30 = vmax.f32 %v1166_v31, 0.0 }
 0x1f0   : > { %v1136_v36 = vpop.permute.xlu1 %1135 }
 0x1f1   : > { %v1280_v38 = vsel %vm1278_vm3, %v1182_v30, 0.0  ;;  %v1323_v11 = vmul.f32 %v1182_v30, %v1182_v30  ;;  %v1174_v40 = vadd.f32 %v1136_v36, %v933_v2  ;;  %1215 = vrot.lane.b32.xlu0 %v1182_v30, %s1587_s26  ;;  %v929_v2 = vadd.f32 %v1975_v60, %v752_v63 }
 0x1f2   : > { %v1281_v42 = vadd.f32 %v1280_v38, %v1279_v9  ;;  %v1173_v30 = vadd.f32 %v1984_v20, %v932_v29  ;;  %v757_v9 = vadd.f32 %v1729_v0, %v1932_v19  ;;  %v758_v60 = vadd.f32 %v1744_v6, %v1932_v19 }
 0x1f3   : > { %v1339_v5 = vsel %vm1278_vm3, %v1323_v11, 0.0  ;;  %v2007_v44 = vmax.f32 %v1174_v40, 0.0 }
 0x1f4   : > { %v1340_v48 = vadd.f32 %v1339_v5, %v1338_v21  ;;  %v1124_v49 = vpop.permute.xlu1 %1123  ;;  %v1283_v50 = vadd.f32 %v1282_v43, %v1281_v42  ;;  %v934_v3 = vadd.f32 %v1990_v47, %v757_v9  ;;  %v1189_v40 = vmax.f32 %v1173_v30, 0.0  ;;  %v907_v42 = vpop.permute.xlu0 %906 }
 0x1f5   : > { %v1168_v51 = vadd.f32 %v1124_v49, %v927_v41  ;;  %1231 = vrot.lane.b32.xlu0 %v2007_v44, %s1587_s26  ;;  %v935_v47 = vadd.f32 %v2000_v37, %v758_v60 }
 0x1f6   : > { %v1342_v52 = vadd.f32 %v1341_v17, %v1340_v48  ;;  %v759_v17 = vadd.f32 %v1932_v19, %v1784_v25  ;;  %v1294_v25 = vsel %vm1278_vm3, %v1189_v40, 0.0 }
 0x1f7   : > { %v1184_v53 = vmax.f32 %v1168_v51, 0.0 }
 0x1f8   : > { %v1130_v54 = vpop.permute.xlu1 %1129 }
 0x1f9   : > { %v1284_v56 = vsel %vm1278_vm3, %v1184_v53, 0.0  ;;  %v1325_v59 = vmul.f32 %v1184_v53, %v1184_v53  ;;  %1219 = vrot.lane.b32.xlu0 %v1184_v53, %s1587_s26  ;;  %v1171_v13 = vadd.f32 %v1130_v54, %v930_v15  ;;  %v1330_v54 = vmul.f32 %v1189_v40, %v1189_v40 }
 0x1fa   : > { %v1285_v61 = vadd.f32 %v1284_v56, %v1283_v50 }
 0x1fb   : > { %v1343_v45 = vsel %vm1278_vm3, %v1325_v59, 0.0  ;;  %v2044_v36 = vmax.f32 %v1171_v13, 0.0  ;;  %v936_v59 = vadd.f32 %v2012_v39, %v759_v17 }
 0x1fc   : > { %v1344_v1 = vadd.f32 %v1343_v45, %v1342_v52  ;;  %v1126_v7 = vpop.permute.xlu1 %1125 }
 0x1fd   : > { %v1169_v46 = vadd.f32 %v1126_v7, %v928_v62  ;;  %v1328_v20 = vmul.f32 %v2044_v36, %v2044_v36  ;;  %v1290_v48 = vsel %vm1278_vm3, %v2044_v36, 0.0  ;;  %v1148_v7 = vpop.permute.xlu0 %1147 }
 0x1ff   : > { %v2025_v16 = vmax.f32 %v1169_v46, 0.0  ;;  %v1349_v55 = vsel %vm1278_vm3, %v1328_v20, 0.0 }
 0x200   : > { %v1132_v18 = vpop.permute.xlu1 %1131 }
 0x201   : > { %v1286_v22 = vsel %vm1278_vm3, %v2025_v16, 0.0  ;;  %v1326_v31 = vmul.f32 %v2025_v16, %v2025_v16  ;;  %v1172_v4 = vadd.f32 %v1132_v18, %v931_v27  ;;  %v1296_v18 = vsel %vm1278_vm3, %v2007_v44, 0.0 }
 0x202   : > { %v1287_v12 = vadd.f32 %v1286_v22, %v1285_v61  ;;  %v762_v61 = vadd.f32 %v1788_v28, %v1932_v19  ;;  %v1353_v28 = vsel %vm1278_vm3, %v1330_v54, 0.0  ;;  %v937_v22 = vadd.f32 %v2021_v14, %v760_v24 }
 0x203   : > { %v1345_v34 = vsel %vm1278_vm3, %v1326_v31, 0.0  ;;  %v1188_v38 = vmax.f32 %v1172_v4, 0.0  ;;  %v938_v14 = vadd.f32 %v2038_v32, %v1943_v8 }
 0x204   : > { %v1346_v58 = vadd.f32 %v1345_v34, %v1344_v1  ;;  %v1128_v33 = vpop.permute.xlu1 %1127  ;;  %v1331_v1 = vmul.f32 %v2007_v44, %v2007_v44  ;;  %v939_v15 = vadd.f32 %v907_v42, %v762_v61 }
 0x205   : > { %v1170_v23 = vadd.f32 %v1128_v33, %v929_v2  ;;  %v1329_v6 = vmul.f32 %v1188_v38, %v1188_v38  ;;  %v1292_v56 = vsel %vm1278_vm3, %v1188_v38, 0.0 }
 0x206   : > { %v1180_v31 = vadd.f32 %v1148_v7, %v939_v15  ;;  %v1355_v29 = vsel %vm1278_vm3, %v1331_v1, 0.0 }
 0x207   : > { %v2047_v11 = vmax.f32 %v1170_v23, 0.0  ;;  %v1351_v10 = vsel %vm1278_vm3, %v1329_v6, 0.0 }
 0x208   : > { %v1138_v41 = vpop.permute.xlu1 %1137  ;;  %v1196_v60 = vmax.f32 %v1180_v31, 0.0 }
 0x209   : > { %v1288_v0 = vsel %vm1278_vm3, %v2047_v11, 0.0  ;;  %v1327_v21 = vmul.f32 %v2047_v11, %v2047_v11  ;;  %v1175_v43 = vadd.f32 %v1138_v41, %v934_v3 }
 0x20a   : > { %v1289_v5 = vadd.f32 %v1288_v0, %v1287_v12 }
 0x20b   : > { %v1347_v49 = vsel %vm1278_vm3, %v1327_v21, 0.0  ;;  %v1191_v50 = vmax.f32 %v1175_v43, 0.0 }
 0x20c   : > { %v1291_v51 = vadd.f32 %v1290_v48, %v1289_v5  ;;  %v1348_v52 = vadd.f32 %v1347_v49, %v1346_v58  ;;  %v1140_v53 = vpop.permute.xlu1 %1139 }
 0x20d   : > { %v1176_v37 = vadd.f32 %v1140_v53, %v935_v47  ;;  %1233 = vrot.lane.b32.xlu1 %v1191_v50, %s1587_s26  ;;  %v1332_v27 = vmul.f32 %v1191_v50, %v1191_v50  ;;  %v1298_v12 = vsel %vm1278_vm3, %v1191_v50, 0.0  ;;  %v1337_v50 = vmul.f32 %v1196_v60, %v1196_v60 }
 0x20e   : > { %v1293_v62 = vadd.f32 %v1292_v56, %v1291_v51  ;;  %v1350_v45 = vadd.f32 %v1349_v55, %v1348_v52 }
 0x20f   : > { %v1192_v46 = vmax.f32 %v1176_v37, 0.0  ;;  %v1357_v58 = vsel %vm1278_vm3, %v1332_v27, 0.0  ;;  %v1367_v56 = vsel %vm1278_vm3, %v1337_v50, 0.0 }
 0x210   : > { %v1352_v63 = vadd.f32 %v1351_v10, %v1350_v45  ;;  %v1295_v39 = vadd.f32 %v1294_v25, %v1293_v62  ;;  %v1142_v57 = vpop.permute.xlu1 %1141 }
 0x211   : > { %v1177_v13 = vadd.f32 %v1142_v57, %v936_v59  ;;  %1213 = vrot.lane.b32.xlu1 %v1988_v26, %s1587_s26  ;;  %1235 = vrot.lane.b32.xlu0 %v1192_v46, %s1587_s26  ;;  %v1333_v2 = vmul.f32 %v1192_v46, %v1192_v46  ;;  %v1300_v26 = vsel %vm1278_vm3, %v1192_v46, 0.0 }
 0x212   : > { %v1297_v35 = vadd.f32 %v1296_v18, %v1295_v39  ;;  %v1354_v19 = vadd.f32 %v1353_v28, %v1352_v63 }
 0x213   : > { %v1193_v34 = vmax.f32 %v1177_v13, 0.0  ;;  %v1359_v41 = vsel %vm1278_vm3, %v1333_v2, 0.0 }
 0x214   : > { %v1299_v4 = vadd.f32 %v1298_v12, %v1297_v35  ;;  %v1356_v44 = vadd.f32 %v1355_v29, %v1354_v19  ;;  %v1144_v30 = vpop.permute.xlu1 %1143 }
 0x215   : > { %v1334_v33 = vmul.f32 %v1193_v34, %v1193_v34  ;;  %v1178_v9 = vadd.f32 %v1144_v30, %v937_v22  ;;  %1229 = vrot.lane.b32.xlu1 %v1189_v40, %s1587_s26  ;;  %1227 = vrot.lane.b32.xlu0 %v1188_v38, %s1587_s26  ;;  %v1302_v42 = vsel %vm1278_vm3, %v1193_v34, 0.0 }
 0x216   : > { %v1358_v23 = vadd.f32 %v1357_v58, %v1356_v44  ;;  %v1301_v3 = vadd.f32 %v1300_v26, %v1299_v4 }
 0x217   : > { %v1194_v20 = vmax.f32 %v1178_v9, 0.0  ;;  %v1361_v47 = vsel %vm1278_vm3, %v1334_v33, 0.0 }
 0x218   : > { %v1360_v0 = vadd.f32 %v1359_v41, %v1358_v23  ;;  %v1303_v21 = vadd.f32 %v1302_v42, %v1301_v3  ;;  %v1146_v43 = vpop.permute.xlu1 %1145 }
 0x219   : > { %v1304_v40 = vsel %vm1278_vm3, %v1194_v20, 0.0  ;;  %v1335_v5 = vmul.f32 %v1194_v20, %v1194_v20  ;;  %v1179_v38 = vadd.f32 %v1146_v43, %v938_v14  ;;  %1225 = vrot.lane.b32.xlu1 %v2044_v36, %s1587_s26  ;;  %1243 = vrot.lane.b32.xlu0 %v1196_v60, %s1587_s26  ;;  %v1308_v36 = vsel %vm1278_vm3, %v1196_v60, 0.0 }
 0x21a   : > { %v1362_v8 = vadd.f32 %v1361_v47, %v1360_v0  ;;  %v1305_v32 = vadd.f32 %v1304_v40, %v1303_v21 }
 0x21b   : > { %v1363_v48 = vsel %vm1278_vm3, %v1335_v5, 0.0  ;;  %v1195_v6 = vmax.f32 %v1179_v38, 0.0 }
 0x21c   : > { %v1364_v49 = vadd.f32 %v1363_v48, %v1362_v8 }
 0x21d   : > { %v1306_v17 = vsel %vm1278_vm3, %v1195_v6, 0.0  ;;  %v1336_v51 = vmul.f32 %v1195_v6, %v1195_v6  ;;  %1241 = vrot.lane.b32.xlu1 %v1195_v6, %s1587_s26  ;;  %1223 = vrot.lane.b32.xlu0 %v2047_v11, %s1587_s26 }
 0x21e   : > { %v1307_v52 = vadd.f32 %v1306_v17, %v1305_v32 }
 0x21f   : > { %v1365_v53 = vsel %vm1278_vm3, %v1336_v51, 0.0 }
 0x220   : > { %v1309_v54 = vadd.f32 %v1308_v36, %v1307_v52  ;;  %v1366_v55 = vadd.f32 %v1365_v53, %v1364_v49 }
 0x221   : > { %1221 = vrot.lane.b32.xlu1 %v2025_v16, %s1587_s26  ;;  %1239 = vrot.lane.b32.xlu0 %v1194_v20, %s1587_s26 }
 0x222   : > { %v1310_v37 = vrot.slane %v1309_v54, 4  ;;  %v1368_v59 = vadd.f32 %v1367_v56, %v1366_v55 }
 0x224   : > { %v1311_v61 = vadd.f32 %v1310_v37, %v1309_v54  ;;  %v1369_v62 = vrot.slane %v1368_v59, 4 }
 0x225   : > { %1237 = vrot.lane.b32.xlu1 %v1193_v34, %s1587_s26 }
 0x226   : > { %v1312_v11 = vrot.slane %v1311_v61, 2  ;;  %v1370_v45 = vadd.f32 %v1369_v62, %v1368_v59 }
 0x228   : > { %v1313_v25 = vadd.f32 %v1312_v11, %v1311_v61  ;;  %v1371_v1 = vrot.slane %v1370_v45, 2 }
 0x22a   : > { %v1314_v7 = vrot.slane %v1313_v25, 1  ;;  %v1372_v10 = vadd.f32 %v1371_v1, %v1370_v45 }
 0x22c   : > { %v1315_v46 = vadd.f32 %v1314_v7, %v1313_v25  ;;  %v1373_v24 = vrot.slane %v1372_v10, 1 }
 0x22e   : > { %1317 = vrot.lane.b32.xlu1 %v1315_v46, %s1587_s26  ;;  %v1374_v16 = vadd.f32 %v1373_v24, %v1372_v10 }
 0x230   : > { %1376 = vrot.lane.b32.xlu0 %v1374_v16, %s1587_s26 }
 0x251   : > { %v1218_v15 = vpop.permute.xlu1 %1217 }
 0x252   : > { %1264 = vst.msk [vmem:[%s2116_s30 + $0x10] sm:$0xff] %vm1261_vm4, %v1218_v15 }
 0x263   : > { %v1216_v63 = vpop.permute.xlu0 %1215 }
 0x264   : > { %1263 = vst.msk [vmem:[%s2116_s30 + $0x8] sm:$0xff] %vm1261_vm4, %v1216_v63 }
 0x267   : > { %v1232_v39 = vpop.permute.xlu0 %1231 }
 0x268   : > { %1271 = vst.msk [vmem:[%s2116_s30 + $0x48] sm:$0xff] %vm1261_vm4, %v1232_v39 }
 0x26b   : > { %v1220_v57 = vpop.permute.xlu0 %1219 }
 0x26c   : > { %1265 = vst.msk [vmem:[%s2116_s30 + $0x18] sm:$0xff] %vm1261_vm4, %v1220_v57 }
 0x27f   : > { %v1234_v28 = vpop.permute.xlu1 %1233 }
 0x280   : > { %1272 = vst.msk [vmem:[%s2116_s30 + $0x50] sm:$0xff] %vm1261_vm4, %v1234_v28 }
 0x283   : > { %v1214_v18 = vpop.permute.xlu1 %1213  ;;  %v1236_v27 = vpop.permute.xlu0 %1235 }
 0x284   : > { %1262 = vst.msk [vmem:[%s2116_s30] sm:$0xff] %vm1261_vm4, %v1214_v18  ;;  %1273 = vst.msk [vmem:[%s2116_s30 + $0x58] sm:$0xff] %vm1261_vm4, %v1236_v27 }
 0x287   : > { %v1230_v13 = vpop.permute.xlu1 %1229  ;;  %v1228_v22 = vpop.permute.xlu0 %1227 }
 0x288   : > { %1270 = vst.msk [vmem:[%s2116_s30 + $0x40] sm:$0xff] %vm1261_vm4, %v1230_v13  ;;  %1269 = vst.msk [vmem:[%s2116_s30 + $0x38] sm:$0xff] %vm1261_vm4, %v1228_v22 }
 0x28b   : > { %v1226_v31 = vpop.permute.xlu1 %1225  ;;  %v1244_v35 = vpop.permute.xlu0 %1243 }
 0x28c   : > { %1268 = vst.msk [vmem:[%s2116_s30 + $0x30] sm:$0xff] %vm1261_vm4, %v1226_v31  ;;  %1277 = vst.msk [vmem:[%s2116_s30 + $0x78] sm:$0xff] %vm1261_vm4, %v1244_v35 }
 0x28f   : > { %v1242_v19 = vpop.permute.xlu1 %1241  ;;  %v1224_v29 = vpop.permute.xlu0 %1223 }
 0x290   : > { %1276 = vst.msk [vmem:[%s2116_s30 + $0x70] sm:$0xff] %vm1261_vm4, %v1242_v19  ;;  %1267 = vst.msk [vmem:[%s2116_s30 + $0x28] sm:$0xff] %vm1261_vm4, %v1224_v29 }
 0x293   : > { %v1222_v12 = vpop.permute.xlu1 %1221  ;;  %v1240_v2 = vpop.permute.xlu0 %1239 }
 0x294   : > { %1266 = vst.msk [vmem:[%s2116_s30 + $0x20] sm:$0xff] %vm1261_vm4, %v1222_v12  ;;  %1275 = vst.msk [vmem:[%s2116_s30 + $0x68] sm:$0xff] %vm1261_vm4, %v1240_v2 }
 0x297   : > { %v1238_v34 = vpop.permute.xlu1 %1237 }
 0x298   : > { %1274 = vst.msk [vmem:[%s2116_s30 + $0x60] sm:$0xff] %vm1261_vm4, %v1238_v34 }
 0x2a0   : > { %v1318_v4 = vpop.permute.xlu1 %1317 }
 0x2a1   : > { %1321 = vst.msk [vmem:[%s300_s9] sm:$0x1] %vm1320_vm5, %v1318_v4 }
 0x2a2   : > { %v1377_v44 = vpop.permute.xlu0 %1376 }
 0x2a3   : > { %1379 = vst.msk [vmem:[%s303_s12] sm:$0x1] %vm1320_vm5, %v1377_v44 }
 0x2a4 PF: > { %s18_s24 = sadd.s32 1, %s1583_s24  }
 0x2a5   : > { %p15_p5 = scmp.ge.s32.totalorder %s18_s24, 4  }
 0x2a7   :  { %17 = sbr.rel (!%p15_p5) target bundleno = 1 (0x1), region = 94 }

</bundles_post_ra>
